<compile_context>
chip_gen: v7x
topology: tpu7x:2x2x1
jax: 0.10.0
libtpu: 0.0.40
codegen_flags: <defaults>
</compile_context>

<pallas_src>
import functools

import numpy as np
import jax
import jax.numpy as jnp
from jax.experimental import pallas as pl
from jax.experimental.pallas import tpu as pltpu

KW = 4        # conv kernel size
STRIDE = 2
PADW = 1
LRELU_SLOPE = 0.2
IN_EPS = 1e-5


# ----------------------------------------------------------------------------
# Pallas kernels
# ----------------------------------------------------------------------------
def _conv_in_lrelu_kernel(p_ref, w_ref, g_ref, b_ref, o_ref):
    """One conv layer (im2col matmul) + InstanceNorm(affine) + LeakyReLU, per sample.

    p_ref: (1, K, P) bf16 patches   w_ref: (C, K) bf16
    g_ref/b_ref: (C, 1) f32 IN affine   o_ref: (1, C, P) bf16
    """
    y = jnp.dot(w_ref[...], p_ref[0], preferred_element_type=jnp.float32)  # (C, P) f32

    # Single-pass instance norm over the spatial (lane) axis.
    mean = jnp.mean(y, axis=-1, keepdims=True)
    meansq = jnp.mean(y * y, axis=-1, keepdims=True)
    var = jnp.maximum(meansq - mean * mean, 0.0)          # biased var (matches PyTorch IN)
    y = (y - mean) * jax.lax.rsqrt(var + IN_EPS)
    y = y * g_ref[...] + b_ref[...]
    y = jnp.where(y > 0, y, LRELU_SLOPE * y)              # LeakyReLU(0.2), f32 epilogue
    o_ref[0] = y.astype(o_ref.dtype)


def _tail_kernel(p_ref, w4_ref, g4_ref, b4_ref, w5_ref, b5_ref, w6_ref, b6_ref, o_ref):
    """Fused tail, per sample:
       conv4 + IN + LReLU + AdaptiveMaxPool2d(1) + Linear + LReLU + Linear + Sigmoid.

    p_ref: (1, K, P) bf16   w4_ref: (C4, K) bf16   g4/b4: (C4, 1) f32
    w5_ref: (H1, C4) bf16   b5_ref: (H1, 1) f32
    w6_ref: (1, H1)  bf16   b6_ref: (1, 1)  f32    o_ref: (1, 1, 1) f32
    """
    y = jnp.dot(w4_ref[...], p_ref[0], preferred_element_type=jnp.float32)  # (C4, P)
    mean = jnp.mean(y, axis=-1, keepdims=True)
    meansq = jnp.mean(y * y, axis=-1, keepdims=True)
    var = jnp.maximum(meansq - mean * mean, 0.0)
    y = (y - mean) * jax.lax.rsqrt(var + IN_EPS)
    y = y * g4_ref[...] + b4_ref[...]
    y = jnp.where(y > 0, y, LRELU_SLOPE * y)

    feat = jnp.max(y, axis=-1, keepdims=True)             # AdaptiveMaxPool2d(1) -> (C4, 1)

    # TODO(synk): Dropout(0.3) is identity at inference; train-mode masking not applied.
    h1 = jnp.dot(w5_ref[...], feat.astype(w5_ref.dtype),
                 preferred_element_type=jnp.float32) + b5_ref[...]          # (H1, 1)
    h1 = jnp.where(h1 > 0, h1, LRELU_SLOPE * h1)
    h2 = jnp.dot(w6_ref[...], h1.astype(w6_ref.dtype),
                 preferred_element_type=jnp.float32) + b6_ref[...]          # (1, 1)
    o_ref[0] = jax.nn.sigmoid(h2)


# ----------------------------------------------------------------------------
# pallas_call wrappers
# ----------------------------------------------------------------------------
def conv_in_lrelu(patches, w_mat, gamma, beta):
    """patches: (N, K, P) bf16, w_mat: (C, K) bf16, gamma/beta: (C, 1) -> (N, C, P) bf16."""
    N, K, P = patches.shape
    C = w_mat.shape[0]
    return pl.pallas_call(
        _conv_in_lrelu_kernel,
        out_shape=jax.ShapeDtypeStruct((N, C, P), jnp.bfloat16),
        grid=(N,),
        in_specs=[
            pl.BlockSpec((1, K, P), lambda n: (n, 0, 0)),
            pl.BlockSpec((C, K), lambda n: (0, 0)),
            pl.BlockSpec((C, 1), lambda n: (0, 0)),
            pl.BlockSpec((C, 1), lambda n: (0, 0)),
        ],
        out_specs=pl.BlockSpec((1, C, P), lambda n: (n, 0, 0)),
        compiler_params=pltpu.CompilerParams(dimension_semantics=("parallel",)),
    )(patches, w_mat, gamma, beta)


def tail(patches, w4, g4, b4, w5, b5, w6, b6):
    """patches: (N, K, P) bf16 -> (N, 1) f32 (sigmoid scores)."""
    N, K, P = patches.shape
    C4 = w4.shape[0]
    H1 = w5.shape[0]
    out = pl.pallas_call(
        _tail_kernel,
        out_shape=jax.ShapeDtypeStruct((N, 1, 1), jnp.float32),
        grid=(N,),
        in_specs=[
            pl.BlockSpec((1, K, P), lambda n: (n, 0, 0)),
            pl.BlockSpec((C4, K), lambda n: (0, 0)),
            pl.BlockSpec((C4, 1), lambda n: (0, 0)),
            pl.BlockSpec((C4, 1), lambda n: (0, 0)),
            pl.BlockSpec((H1, C4), lambda n: (0, 0)),
            pl.BlockSpec((H1, 1), lambda n: (0, 0)),
            pl.BlockSpec((1, H1), lambda n: (0, 0)),
            pl.BlockSpec((1, 1), lambda n: (0, 0)),
        ],
        out_specs=pl.BlockSpec((1, 1, 1), lambda n: (n, 0, 0)),
        compiler_params=pltpu.CompilerParams(dimension_semantics=("parallel",)),
    )(patches, w4, g4, b4, w5, b5, w6, b6)
    return out.reshape(N, 1)


# ----------------------------------------------------------------------------
# JAX glue: padding + NCHW im2col (K ordering = (Cin, kh, kw) to match the
# flattened PyTorch weight (Cout, Cin, kh, kw)), parameter setup.
# ----------------------------------------------------------------------------
def pad_and_im2col_nchw(x, k=KW, stride=STRIDE, pad=PADW):
    """x: (N, C, H, W) -> patches (N, C*k*k, Hout*Wout) bf16, plus Hout, Wout."""
    xp = jnp.pad(x.astype(jnp.bfloat16),
                 ((0, 0), (0, 0), (pad, pad), (pad, pad)))
    N, C, Hp, Wp = xp.shape
    Hout = (Hp - k) // stride + 1
    Wout = (Wp - k) // stride + 1
    cols = []
    for i in range(k):
        for j in range(k):
            cols.append(xp[:, :, i:i + stride * Hout:stride, j:j + stride * Wout:stride])
    p = jnp.stack(cols, axis=2)                      # (N, C, k*k, Hout, Wout)
    p = p.reshape(N, C * k * k, Hout * Wout)         # K = (Cin, kh, kw) flattened
    return p, Hout, Wout


def spectral_normalize(w):
    """Exact spectral normalization (top singular value of the (Cout, -1) matricization).
    nn.utils.spectral_norm uses warm-started power iteration; exact sigma is the limit."""
    wm = np.asarray(w, dtype=np.float32).reshape(w.shape[0], -1)
    sigma = float(np.linalg.svd(wm, compute_uv=False)[0])
    return w / jnp.float32(sigma)


def init_params(key, in_channel, ndf):
    nf = ndf // 2                                    # module does ndf = ndf // 2
    c1, c2, c3, c4 = nf, 2 * nf, 4 * nf, 8 * nf
    h1 = 4 * nf
    ks = jax.random.split(key, 8)

    def nrm(k, shape, scale=0.05):
        return scale * jax.random.normal(k, shape, dtype=jnp.float32)

    def conv_w(k, cout, cin):
        w = spectral_normalize(nrm(k, (cout, cin, KW, KW)))
        return w.reshape(cout, cin * KW * KW).astype(jnp.bfloat16)   # (Cout, K)

    def in_affine(c):   # PyTorch InstanceNorm2d(affine=True) init: weight=1, bias=0
        return jnp.ones((c, 1), jnp.float32), jnp.zeros((c, 1), jnp.float32)

    g1, b1 = in_affine(c1)
    g2, b2 = in_affine(c2)
    g3, b3 = in_affine(c3)
    g4, b4 = in_affine(c4)
    return {
        "w1": conv_w(ks[0], c1, in_channel), "g1": g1, "b1": b1,
        "w2": conv_w(ks[1], c2, c1),         "g2": g2, "b2": b2,
        "w3": conv_w(ks[2], c3, c2),         "g3": g3, "b3": b3,
        "w4": conv_w(ks[3], c4, c3),         "g4": g4, "b4": b4,
        "w5": spectral_normalize(nrm(ks[4], (h1, c4))).astype(jnp.bfloat16),
        "b5": nrm(ks[5], (h1, 1)),
        "w6": spectral_normalize(nrm(ks[6], (1, h1))).astype(jnp.bfloat16),
        "b6": nrm(ks[7], (1, 1)),
    }


def discriminator_forward(params, x, y):
    """x, y: NCHW float32. Returns (N, 1) sigmoid scores (matches the PyTorch module)."""
    h = jnp.concatenate([x, y], axis=1)              # cat along channel dim, NCHW

    # Conv blocks 1-3: conv + InstanceNorm(affine) + LeakyReLU, fused per layer.
    for l in (1, 2, 3):
        p, Ho, Wo = pad_and_im2col_nchw(h)
        h = conv_in_lrelu(p, params[f"w{l}"], params[f"g{l}"], params[f"b{l}"])
        h = h.reshape(h.shape[0], h.shape[1], Ho, Wo)

    # Fused tail: conv4 + IN + LReLU + global max-pool + Linear/LReLU/Linear/Sigmoid.
    p, _, _ = pad_and_im2col_nchw(h)
    return tail(p, params["w4"], params["g4"], params["b4"],
                params["w5"], params["b5"], params["w6"], params["b6"])


if __name__ == "__main__":
    key = jax.random.PRNGKey(0)
    kx, ky, kp = jax.random.split(key, 3)

    # Small shapes: in_channel defaults to 2 -> x, y each (N=2, 1, 32, 32); ndf=16 -> nf=8.
    N, Cx, H, W = 2, 1, 32, 32
    ndf = 16
    in_channel = 2 * Cx

    x = jax.random.normal(kx, (N, Cx, H, W), dtype=jnp.float32)
    y = jax.random.normal(ky, (N, Cx, H, W), dtype=jnp.float32)
    params = init_params(kp, in_channel, ndf)

    fwd = jax.jit(functools.partial(discriminator_forward, params))
    out = fwd(x, y)
    jax.block_until_ready(out)

    assert out.shape == (N, 1), out.shape
    assert bool(jnp.all((out >= 0.0) & (out <= 1.0)))     # sigmoid output range
    assert bool(jnp.all(jnp.isfinite(out)))
    print("KERNEL_OK")
</pallas_src>

<mosaic_0001>
module attributes {stable_mosaic.version = 11 : i64} {
  func.func @_conv_in_lrelu_kernel(%arg0: i32, %arg1: memref<1x32x256xbf16, #tpu.memory_space<vmem>>, %arg2: memref<8x32xbf16, #tpu.memory_space<vmem>>, %arg3: memref<8x1xf32, #tpu.memory_space<vmem>>, %arg4: memref<8x1xf32, #tpu.memory_space<vmem>>, %arg5: memref<1x8x256xbf16, #tpu.memory_space<vmem>>) attributes {dimension_semantics = [#tpu.dimension_semantics<parallel>], iteration_bounds = array<i64: 2>, scalar_prefetch = 0 : i64, scratch_operands = 0 : i64, tpu.core_type = #tpu.core_type<tc>, window_params = [{transform_indices = @transform_0, window_bounds = array<i64: 1, 32, 256>}, {pipeline_mode = #tpu.pipeline_mode<synchronous>, transform_indices = @transform_1, window_bounds = array<i64: 8, 32>}, {pipeline_mode = #tpu.pipeline_mode<synchronous>, transform_indices = @transform_2, window_bounds = array<i64: 8, 1>}, {pipeline_mode = #tpu.pipeline_mode<synchronous>, transform_indices = @transform_3, window_bounds = array<i64: 8, 1>}, {transform_indices = @transform_4, window_bounds = array<i64: 1, 8, 256>}]} {
    %c0 = arith.constant 0 : index
    %c0_0 = arith.constant 0 : index
    %0 = vector.load %arg2[%c0, %c0_0] : memref<8x32xbf16, #tpu.memory_space<vmem>>, vector<8x32xbf16>
    %c0_1 = arith.constant 0 : index
    %c0_2 = arith.constant 0 : index
    %c0_3 = arith.constant 0 : index
    %1 = vector.load %arg1[%c0_1, %c0_2, %c0_3] : memref<1x32x256xbf16, #tpu.memory_space<vmem>>, vector<1x32x256xbf16>
    %2 = vector.shape_cast %1 : vector<1x32x256xbf16> to vector<32x256xbf16>
    %cst = arith.constant dense<0.000000e+00> : vector<8x256xf32>
    %3 = tpu.matmul %0, %2, %cst {dimension_numbers = #tpu.dot_dimension_numbers<[1], [0], [0], [1], [0, 0, 1, 1], [], []>} : vector<8x32xbf16>, vector<32x256xbf16>, vector<8x256xf32> -> vector<8x256xf32>
    %cst_4 = arith.constant dense<0.000000e+00> : vector<8xf32>
    %4 = vector.multi_reduction <add>, %3, %cst_4 [1] : vector<8x256xf32> to vector<8xf32>
    %5 = vector.shape_cast %4 : vector<8xf32> to vector<8x1xf32>
    %cst_5 = arith.constant 2.560000e+02 : f32
    %6 = vector.broadcast %cst_5 : f32 to vector<8x1xf32>
    %7 = arith.divf %5, %6 : vector<8x1xf32>
    %8 = arith.mulf %3, %3 : vector<8x256xf32>
    %cst_6 = arith.constant dense<0.000000e+00> : vector<8xf32>
    %9 = vector.multi_reduction <add>, %8, %cst_6 [1] : vector<8x256xf32> to vector<8xf32>
    %10 = vector.shape_cast %9 : vector<8xf32> to vector<8x1xf32>
    %cst_7 = arith.constant 2.560000e+02 : f32
    %11 = vector.broadcast %cst_7 : f32 to vector<8x1xf32>
    %12 = arith.divf %10, %11 : vector<8x1xf32>
    %13 = arith.mulf %7, %7 : vector<8x1xf32>
    %14 = arith.subf %12, %13 : vector<8x1xf32>
    %cst_8 = arith.constant 0.000000e+00 : f32
    %15 = vector.broadcast %cst_8 : f32 to vector<8x1xf32>
    %16 = arith.maximumf %14, %15 : vector<8x1xf32>
    %17 = vector.broadcast %7 : vector<8x1xf32> to vector<8x256xf32>
    %18 = arith.subf %3, %17 : vector<8x256xf32>
    %cst_9 = arith.constant 9.99999974E-6 : f32
    %19 = vector.broadcast %cst_9 : f32 to vector<8x1xf32>
    %20 = arith.addf %16, %19 : vector<8x1xf32>
    %21 = math.rsqrt %20 : vector<8x1xf32>
    %22 = vector.broadcast %21 : vector<8x1xf32> to vector<8x256xf32>
    %23 = arith.mulf %18, %22 : vector<8x256xf32>
    %c0_10 = arith.constant 0 : index
    %c0_11 = arith.constant 0 : index
    %24 = vector.load %arg3[%c0_10, %c0_11] : memref<8x1xf32, #tpu.memory_space<vmem>>, vector<8x1xf32>
    %25 = vector.broadcast %24 : vector<8x1xf32> to vector<8x256xf32>
    %26 = arith.mulf %23, %25 : vector<8x256xf32>
    %c0_12 = arith.constant 0 : index
    %c0_13 = arith.constant 0 : index
    %27 = vector.load %arg4[%c0_12, %c0_13] : memref<8x1xf32, #tpu.memory_space<vmem>>, vector<8x1xf32>
    %28 = vector.broadcast %27 : vector<8x1xf32> to vector<8x256xf32>
    %29 = arith.addf %26, %28 : vector<8x256xf32>
    %cst_14 = arith.constant 0.000000e+00 : f32
    %30 = vector.broadcast %cst_14 : f32 to vector<8x256xf32>
    %31 = arith.cmpf ogt, %29, %30 : vector<8x256xf32>
    %cst_15 = arith.constant 2.000000e-01 : f32
    %32 = vector.broadcast %cst_15 : f32 to vector<8x256xf32>
    %33 = arith.mulf %32, %29 : vector<8x256xf32>
    %34 = arith.select %31, %29, %33 : vector<8x256xi1>, vector<8x256xf32>
    %35 = arith.truncf %34 : vector<8x256xf32> to vector<8x256xbf16>
    %c0_16 = arith.constant 0 : index
    %c0_17 = arith.constant 0 : index
    %c0_18 = arith.constant 0 : index
    %36 = vector.load %arg5[%c0_16, %c0_17, %c0_18] : memref<1x8x256xbf16, #tpu.memory_space<vmem>>, vector<1x8x256xbf16>
    %37 = vector.shape_cast %36 : vector<1x8x256xbf16> to vector<8x256xbf16>
    %38 = vector.shape_cast %35 : vector<8x256xbf16> to vector<1x8x256xbf16>
    tpu.vector_store %arg5[%c0_16, %c0_17, %c0_18], %38 {strides = array<i32>} : memref<1x8x256xbf16, #tpu.memory_space<vmem>>, vector<1x8x256xbf16>,
    return
  }
  func.func @transform_0(%arg0: i32) -> (i32, i32, i32) {
    %c0_i32 = arith.constant 0 : i32
    %c0_i32_0 = arith.constant 0 : i32
    %c0_i32_1 = arith.constant 0 : i32
    return %arg0, %c0_i32, %c0_i32_0 : i32, i32, i32
  }
  func.func @transform_1(%arg0: i32) -> (i32, i32) {
    %c0_i32 = arith.constant 0 : i32
    %c0_i32_0 = arith.constant 0 : i32
    %c0_i32_1 = arith.constant 0 : i32
    return %c0_i32, %c0_i32_0 : i32, i32
  }
  func.func @transform_2(%arg0: i32) -> (i32, i32) {
    %c0_i32 = arith.constant 0 : i32
    %c0_i32_0 = arith.constant 0 : i32
    %c0_i32_1 = arith.constant 0 : i32
    return %c0_i32, %c0_i32_0 : i32, i32
  }
  func.func @transform_3(%arg0: i32) -> (i32, i32) {
    %c0_i32 = arith.constant 0 : i32
    %c0_i32_0 = arith.constant 0 : i32
    %c0_i32_1 = arith.constant 0 : i32
    return %c0_i32, %c0_i32_0 : i32, i32
  }
  func.func @transform_4(%arg0: i32) -> (i32, i32, i32) {
    %c0_i32 = arith.constant 0 : i32
    %c0_i32_0 = arith.constant 0 : i32
    %c0_i32_1 = arith.constant 0 : i32
    return %arg0, %c0_i32, %c0_i32_0 : i32, i32, i32
  }
}

module attributes {stable_mosaic.version = 11 : i64} {
  func.func @_conv_in_lrelu_kernel(%arg0: i32, %arg1: memref<1x128x64xbf16, #tpu.memory_space<vmem>>, %arg2: memref<16x128xbf16, #tpu.memory_space<vmem>>, %arg3: memref<16x1xf32, #tpu.memory_space<vmem>>, %arg4: memref<16x1xf32, #tpu.memory_space<vmem>>, %arg5: memref<1x16x64xbf16, #tpu.memory_space<vmem>>) attributes {dimension_semantics = [#tpu.dimension_semantics<parallel>], iteration_bounds = array<i64: 2>, scalar_prefetch = 0 : i64, scratch_operands = 0 : i64, tpu.core_type = #tpu.core_type<tc>, window_params = [{transform_indices = @transform_0, window_bounds = array<i64: 1, 128, 64>}, {pipeline_mode = #tpu.pipeline_mode<synchronous>, transform_indices = @transform_1, window_bounds = array<i64: 16, 128>}, {pipeline_mode = #tpu.pipeline_mode<synchronous>, transform_indices = @transform_2, window_bounds = array<i64: 16, 1>}, {pipeline_mode = #tpu.pipeline_mode<synchronous>, transform_indices = @transform_3, window_bounds = array<i64: 16, 1>}, {transform_indices = @transform_4, window_bounds = array<i64: 1, 16, 64>}]} {
    %c0 = arith.constant 0 : index
    %c0_0 = arith.constant 0 : index
    %0 = vector.load %arg2[%c0, %c0_0] : memref<16x128xbf16, #tpu.memory_space<vmem>>, vector<16x128xbf16>
    %c0_1 = arith.constant 0 : index
    %c0_2 = arith.constant 0 : index
    %c0_3 = arith.constant 0 : index
    %1 = vector.load %arg1[%c0_1, %c0_2, %c0_3] : memref<1x128x64xbf16, #tpu.memory_space<vmem>>, vector<1x128x64xbf16>
    %2 = vector.shape_cast %1 : vector<1x128x64xbf16> to vector<128x64xbf16>
    %cst = arith.constant dense<0.000000e+00> : vector<16x64xf32>
    %3 = tpu.matmul %0, %2, %cst {dimension_numbers = #tpu.dot_dimension_numbers<[1], [0], [0], [1], [0, 0, 1, 1], [], []>} : vector<16x128xbf16>, vector<128x64xbf16>, vector<16x64xf32> -> vector<16x64xf32>
    %cst_4 = arith.constant dense<0.000000e+00> : vector<16xf32>
    %4 = vector.multi_reduction <add>, %3, %cst_4 [1] : vector<16x64xf32> to vector<16xf32>
    %5 = vector.shape_cast %4 : vector<16xf32> to vector<16x1xf32>
    %cst_5 = arith.constant 6.400000e+01 : f32
    %6 = vector.broadcast %cst_5 : f32 to vector<16x1xf32>
    %7 = arith.divf %5, %6 : vector<16x1xf32>
    %8 = arith.mulf %3, %3 : vector<16x64xf32>
    %cst_6 = arith.constant dense<0.000000e+00> : vector<16xf32>
    %9 = vector.multi_reduction <add>, %8, %cst_6 [1] : vector<16x64xf32> to vector<16xf32>
    %10 = vector.shape_cast %9 : vector<16xf32> to vector<16x1xf32>
    %cst_7 = arith.constant 6.400000e+01 : f32
    %11 = vector.broadcast %cst_7 : f32 to vector<16x1xf32>
    %12 = arith.divf %10, %11 : vector<16x1xf32>
    %13 = arith.mulf %7, %7 : vector<16x1xf32>
    %14 = arith.subf %12, %13 : vector<16x1xf32>
    %cst_8 = arith.constant 0.000000e+00 : f32
    %15 = vector.broadcast %cst_8 : f32 to vector<16x1xf32>
    %16 = arith.maximumf %14, %15 : vector<16x1xf32>
    %17 = vector.broadcast %7 : vector<16x1xf32> to vector<16x64xf32>
    %18 = arith.subf %3, %17 : vector<16x64xf32>
    %cst_9 = arith.constant 9.99999974E-6 : f32
    %19 = vector.broadcast %cst_9 : f32 to vector<16x1xf32>
    %20 = arith.addf %16, %19 : vector<16x1xf32>
    %21 = math.rsqrt %20 : vector<16x1xf32>
    %22 = vector.broadcast %21 : vector<16x1xf32> to vector<16x64xf32>
    %23 = arith.mulf %18, %22 : vector<16x64xf32>
    %c0_10 = arith.constant 0 : index
    %c0_11 = arith.constant 0 : index
    %24 = vector.load %arg3[%c0_10, %c0_11] : memref<16x1xf32, #tpu.memory_space<vmem>>, vector<16x1xf32>
    %25 = vector.broadcast %24 : vector<16x1xf32> to vector<16x64xf32>
    %26 = arith.mulf %23, %25 : vector<16x64xf32>
    %c0_12 = arith.constant 0 : index
    %c0_13 = arith.constant 0 : index
    %27 = vector.load %arg4[%c0_12, %c0_13] : memref<16x1xf32, #tpu.memory_space<vmem>>, vector<16x1xf32>
    %28 = vector.broadcast %27 : vector<16x1xf32> to vector<16x64xf32>
    %29 = arith.addf %26, %28 : vector<16x64xf32>
    %cst_14 = arith.constant 0.000000e+00 : f32
    %30 = vector.broadcast %cst_14 : f32 to vector<16x64xf32>
    %31 = arith.cmpf ogt, %29, %30 : vector<16x64xf32>
    %cst_15 = arith.constant 2.000000e-01 : f32
    %32 = vector.broadcast %cst_15 : f32 to vector<16x64xf32>
    %33 = arith.mulf %32, %29 : vector<16x64xf32>
    %34 = arith.select %31, %29, %33 : vector<16x64xi1>, vector<16x64xf32>
    %35 = arith.truncf %34 : vector<16x64xf32> to vector<16x64xbf16>
    %c0_16 = arith.constant 0 : index
    %c0_17 = arith.constant 0 : index
    %c0_18 = arith.constant 0 : index
    %36 = vector.load %arg5[%c0_16, %c0_17, %c0_18] : memref<1x16x64xbf16, #tpu.memory_space<vmem>>, vector<1x16x64xbf16>
    %37 = vector.shape_cast %36 : vector<1x16x64xbf16> to vector<16x64xbf16>
    %38 = vector.shape_cast %35 : vector<16x64xbf16> to vector<1x16x64xbf16>
    tpu.vector_store %arg5[%c0_16, %c0_17, %c0_18], %38 {strides = array<i32>} : memref<1x16x64xbf16, #tpu.memory_space<vmem>>, vector<1x16x64xbf16>,
    return
  }
  func.func @transform_0(%arg0: i32) -> (i32, i32, i32) {
    %c0_i32 = arith.constant 0 : i32
    %c0_i32_0 = arith.constant 0 : i32
    %c0_i32_1 = arith.constant 0 : i32
    return %arg0, %c0_i32, %c0_i32_0 : i32, i32, i32
  }
  func.func @transform_1(%arg0: i32) -> (i32, i32) {
    %c0_i32 = arith.constant 0 : i32
    %c0_i32_0 = arith.constant 0 : i32
    %c0_i32_1 = arith.constant 0 : i32
    return %c0_i32, %c0_i32_0 : i32, i32
  }
  func.func @transform_2(%arg0: i32) -> (i32, i32) {
    %c0_i32 = arith.constant 0 : i32
    %c0_i32_0 = arith.constant 0 : i32
    %c0_i32_1 = arith.constant 0 : i32
    return %c0_i32, %c0_i32_0 : i32, i32
  }
  func.func @transform_3(%arg0: i32) -> (i32, i32) {
    %c0_i32 = arith.constant 0 : i32
    %c0_i32_0 = arith.constant 0 : i32
    %c0_i32_1 = arith.constant 0 : i32
    return %c0_i32, %c0_i32_0 : i32, i32
  }
  func.func @transform_4(%arg0: i32) -> (i32, i32, i32) {
    %c0_i32 = arith.constant 0 : i32
    %c0_i32_0 = arith.constant 0 : i32
    %c0_i32_1 = arith.constant 0 : i32
    return %arg0, %c0_i32, %c0_i32_0 : i32, i32, i32
  }
}

module attributes {stable_mosaic.version = 11 : i64} {
  func.func @_conv_in_lrelu_kernel(%arg0: i32, %arg1: memref<1x256x16xbf16, #tpu.memory_space<vmem>>, %arg2: memref<32x256xbf16, #tpu.memory_space<vmem>>, %arg3: memref<32x1xf32, #tpu.memory_space<vmem>>, %arg4: memref<32x1xf32, #tpu.memory_space<vmem>>, %arg5: memref<1x32x16xbf16, #tpu.memory_space<vmem>>) attributes {dimension_semantics = [#tpu.dimension_semantics<parallel>], iteration_bounds = array<i64: 2>, scalar_prefetch = 0 : i64, scratch_operands = 0 : i64, tpu.core_type = #tpu.core_type<tc>, window_params = [{transform_indices = @transform_0, window_bounds = array<i64: 1, 256, 16>}, {pipeline_mode = #tpu.pipeline_mode<synchronous>, transform_indices = @transform_1, window_bounds = array<i64: 32, 256>}, {pipeline_mode = #tpu.pipeline_mode<synchronous>, transform_indices = @transform_2, window_bounds = array<i64: 32, 1>}, {pipeline_mode = #tpu.pipeline_mode<synchronous>, transform_indices = @transform_3, window_bounds = array<i64: 32, 1>}, {transform_indices = @transform_4, window_bounds = array<i64: 1, 32, 16>}]} {
    %c0 = arith.constant 0 : index
    %c0_0 = arith.constant 0 : index
    %0 = vector.load %arg2[%c0, %c0_0] : memref<32x256xbf16, #tpu.memory_space<vmem>>, vector<32x256xbf16>
    %c0_1 = arith.constant 0 : index
    %c0_2 = arith.constant 0 : index
    %c0_3 = arith.constant 0 : index
    %1 = vector.load %arg1[%c0_1, %c0_2, %c0_3] : memref<1x256x16xbf16, #tpu.memory_space<vmem>>, vector<1x256x16xbf16>
    %2 = vector.shape_cast %1 : vector<1x256x16xbf16> to vector<256x16xbf16>
    %cst = arith.constant dense<0.000000e+00> : vector<32x16xf32>
    %3 = tpu.matmul %0, %2, %cst {dimension_numbers = #tpu.dot_dimension_numbers<[1], [0], [0], [1], [0, 0, 1, 1], [], []>} : vector<32x256xbf16>, vector<256x16xbf16>, vector<32x16xf32> -> vector<32x16xf32>
    %cst_4 = arith.constant dense<0.000000e+00> : vector<32xf32>
    %4 = vector.multi_reduction <add>, %3, %cst_4 [1] : vector<32x16xf32> to vector<32xf32>
    %5 = vector.shape_cast %4 : vector<32xf32> to vector<32x1xf32>
    %cst_5 = arith.constant 1.600000e+01 : f32
    %6 = vector.broadcast %cst_5 : f32 to vector<32x1xf32>
    %7 = arith.divf %5, %6 : vector<32x1xf32>
    %8 = arith.mulf %3, %3 : vector<32x16xf32>
    %cst_6 = arith.constant dense<0.000000e+00> : vector<32xf32>
    %9 = vector.multi_reduction <add>, %8, %cst_6 [1] : vector<32x16xf32> to vector<32xf32>
    %10 = vector.shape_cast %9 : vector<32xf32> to vector<32x1xf32>
    %cst_7 = arith.constant 1.600000e+01 : f32
    %11 = vector.broadcast %cst_7 : f32 to vector<32x1xf32>
    %12 = arith.divf %10, %11 : vector<32x1xf32>
    %13 = arith.mulf %7, %7 : vector<32x1xf32>
    %14 = arith.subf %12, %13 : vector<32x1xf32>
    %cst_8 = arith.constant 0.000000e+00 : f32
    %15 = vector.broadcast %cst_8 : f32 to vector<32x1xf32>
    %16 = arith.maximumf %14, %15 : vector<32x1xf32>
    %17 = vector.broadcast %7 : vector<32x1xf32> to vector<32x16xf32>
    %18 = arith.subf %3, %17 : vector<32x16xf32>
    %cst_9 = arith.constant 9.99999974E-6 : f32
    %19 = vector.broadcast %cst_9 : f32 to vector<32x1xf32>
    %20 = arith.addf %16, %19 : vector<32x1xf32>
    %21 = math.rsqrt %20 : vector<32x1xf32>
    %22 = vector.broadcast %21 : vector<32x1xf32> to vector<32x16xf32>
    %23 = arith.mulf %18, %22 : vector<32x16xf32>
    %c0_10 = arith.constant 0 : index
    %c0_11 = arith.constant 0 : index
    %24 = vector.load %arg3[%c0_10, %c0_11] : memref<32x1xf32, #tpu.memory_space<vmem>>, vector<32x1xf32>
    %25 = vector.broadcast %24 : vector<32x1xf32> to vector<32x16xf32>
    %26 = arith.mulf %23, %25 : vector<32x16xf32>
    %c0_12 = arith.constant 0 : index
    %c0_13 = arith.constant 0 : index
    %27 = vector.load %arg4[%c0_12, %c0_13] : memref<32x1xf32, #tpu.memory_space<vmem>>, vector<32x1xf32>
    %28 = vector.broadcast %27 : vector<32x1xf32> to vector<32x16xf32>
    %29 = arith.addf %26, %28 : vector<32x16xf32>
    %cst_14 = arith.constant 0.000000e+00 : f32
    %30 = vector.broadcast %cst_14 : f32 to vector<32x16xf32>
    %31 = arith.cmpf ogt, %29, %30 : vector<32x16xf32>
    %cst_15 = arith.constant 2.000000e-01 : f32
    %32 = vector.broadcast %cst_15 : f32 to vector<32x16xf32>
    %33 = arith.mulf %32, %29 : vector<32x16xf32>
    %34 = arith.select %31, %29, %33 : vector<32x16xi1>, vector<32x16xf32>
    %35 = arith.truncf %34 : vector<32x16xf32> to vector<32x16xbf16>
    %c0_16 = arith.constant 0 : index
    %c0_17 = arith.constant 0 : index
    %c0_18 = arith.constant 0 : index
    %36 = vector.load %arg5[%c0_16, %c0_17, %c0_18] : memref<1x32x16xbf16, #tpu.memory_space<vmem>>, vector<1x32x16xbf16>
    %37 = vector.shape_cast %36 : vector<1x32x16xbf16> to vector<32x16xbf16>
    %38 = vector.shape_cast %35 : vector<32x16xbf16> to vector<1x32x16xbf16>
    tpu.vector_store %arg5[%c0_16, %c0_17, %c0_18], %38 {strides = array<i32>} : memref<1x32x16xbf16, #tpu.memory_space<vmem>>, vector<1x32x16xbf16>,
    return
  }
  func.func @transform_0(%arg0: i32) -> (i32, i32, i32) {
    %c0_i32 = arith.constant 0 : i32
    %c0_i32_0 = arith.constant 0 : i32
    %c0_i32_1 = arith.constant 0 : i32
    return %arg0, %c0_i32, %c0_i32_0 : i32, i32, i32
  }
  func.func @transform_1(%arg0: i32) -> (i32, i32) {
    %c0_i32 = arith.constant 0 : i32
    %c0_i32_0 = arith.constant 0 : i32
    %c0_i32_1 = arith.constant 0 : i32
    return %c0_i32, %c0_i32_0 : i32, i32
  }
  func.func @transform_2(%arg0: i32) -> (i32, i32) {
    %c0_i32 = arith.constant 0 : i32
    %c0_i32_0 = arith.constant 0 : i32
    %c0_i32_1 = arith.constant 0 : i32
    return %c0_i32, %c0_i32_0 : i32, i32
  }
  func.func @transform_3(%arg0: i32) -> (i32, i32) {
    %c0_i32 = arith.constant 0 : i32
    %c0_i32_0 = arith.constant 0 : i32
    %c0_i32_1 = arith.constant 0 : i32
    return %c0_i32, %c0_i32_0 : i32, i32
  }
  func.func @transform_4(%arg0: i32) -> (i32, i32, i32) {
    %c0_i32 = arith.constant 0 : i32
    %c0_i32_0 = arith.constant 0 : i32
    %c0_i32_1 = arith.constant 0 : i32
    return %arg0, %c0_i32, %c0_i32_0 : i32, i32, i32
  }
}

module attributes {stable_mosaic.version = 11 : i64} {
  func.func @_tail_kernel(%arg0: i32, %arg1: memref<1x512x4xbf16, #tpu.memory_space<vmem>>, %arg2: memref<64x512xbf16, #tpu.memory_space<vmem>>, %arg3: memref<64x1xf32, #tpu.memory_space<vmem>>, %arg4: memref<64x1xf32, #tpu.memory_space<vmem>>, %arg5: memref<32x64xbf16, #tpu.memory_space<vmem>>, %arg6: memref<32x1xf32, #tpu.memory_space<vmem>>, %arg7: memref<1x32xbf16, #tpu.memory_space<vmem>>, %arg8: memref<1x1xf32, #tpu.memory_space<vmem>>, %arg9: memref<1x1x1xf32, #tpu.memory_space<vmem>>) attributes {dimension_semantics = [#tpu.dimension_semantics<parallel>], iteration_bounds = array<i64: 2>, scalar_prefetch = 0 : i64, scratch_operands = 0 : i64, tpu.core_type = #tpu.core_type<tc>, window_params = [{transform_indices = @transform_0, window_bounds = array<i64: 1, 512, 4>}, {pipeline_mode = #tpu.pipeline_mode<synchronous>, transform_indices = @transform_1, window_bounds = array<i64: 64, 512>}, {pipeline_mode = #tpu.pipeline_mode<synchronous>, transform_indices = @transform_2, window_bounds = array<i64: 64, 1>}, {pipeline_mode = #tpu.pipeline_mode<synchronous>, transform_indices = @transform_3, window_bounds = array<i64: 64, 1>}, {pipeline_mode = #tpu.pipeline_mode<synchronous>, transform_indices = @transform_4, window_bounds = array<i64: 32, 64>}, {pipeline_mode = #tpu.pipeline_mode<synchronous>, transform_indices = @transform_5, window_bounds = array<i64: 32, 1>}, {pipeline_mode = #tpu.pipeline_mode<synchronous>, transform_indices = @transform_6, window_bounds = array<i64: 1, 32>}, {pipeline_mode = #tpu.pipeline_mode<synchronous>, transform_indices = @transform_7, window_bounds = array<i64: 1, 1>}, {transform_indices = @transform_8, window_bounds = array<i64: 1, 1, 1>}]} {
    %c0 = arith.constant 0 : index
    %c0_0 = arith.constant 0 : index
    %0 = vector.load %arg2[%c0, %c0_0] : memref<64x512xbf16, #tpu.memory_space<vmem>>, vector<64x512xbf16>
    %c0_1 = arith.constant 0 : index
    %c0_2 = arith.constant 0 : index
    %c0_3 = arith.constant 0 : index
    %1 = vector.load %arg1[%c0_1, %c0_2, %c0_3] : memref<1x512x4xbf16, #tpu.memory_space<vmem>>, vector<1x512x4xbf16>
    %2 = vector.shape_cast %1 : vector<1x512x4xbf16> to vector<512x4xbf16>
    %cst = arith.constant dense<0.000000e+00> : vector<64x4xf32>
    %3 = tpu.matmul %0, %2, %cst {dimension_numbers = #tpu.dot_dimension_numbers<[1], [0], [0], [1], [0, 0, 1, 1], [], []>} : vector<64x512xbf16>, vector<512x4xbf16>, vector<64x4xf32> -> vector<64x4xf32>
    %cst_4 = arith.constant dense<0.000000e+00> : vector<64xf32>
    %4 = vector.multi_reduction <add>, %3, %cst_4 [1] : vector<64x4xf32> to vector<64xf32>
    %5 = vector.shape_cast %4 : vector<64xf32> to vector<64x1xf32>
    %cst_5 = arith.constant 4.000000e+00 : f32
    %6 = vector.broadcast %cst_5 : f32 to vector<64x1xf32>
    %7 = arith.divf %5, %6 : vector<64x1xf32>
    %8 = arith.mulf %3, %3 : vector<64x4xf32>
    %cst_6 = arith.constant dense<0.000000e+00> : vector<64xf32>
    %9 = vector.multi_reduction <add>, %8, %cst_6 [1] : vector<64x4xf32> to vector<64xf32>
    %10 = vector.shape_cast %9 : vector<64xf32> to vector<64x1xf32>
    %cst_7 = arith.constant 4.000000e+00 : f32
    %11 = vector.broadcast %cst_7 : f32 to vector<64x1xf32>
    %12 = arith.divf %10, %11 : vector<64x1xf32>
    %13 = arith.mulf %7, %7 : vector<64x1xf32>
    %14 = arith.subf %12, %13 : vector<64x1xf32>
    %cst_8 = arith.constant 0.000000e+00 : f32
    %15 = vector.broadcast %cst_8 : f32 to vector<64x1xf32>
    %16 = arith.maximumf %14, %15 : vector<64x1xf32>
    %17 = vector.broadcast %7 : vector<64x1xf32> to vector<64x4xf32>
    %18 = arith.subf %3, %17 : vector<64x4xf32>
    %cst_9 = arith.constant 9.99999974E-6 : f32
    %19 = vector.broadcast %cst_9 : f32 to vector<64x1xf32>
    %20 = arith.addf %16, %19 : vector<64x1xf32>
    %21 = math.rsqrt %20 : vector<64x1xf32>
    %22 = vector.broadcast %21 : vector<64x1xf32> to vector<64x4xf32>
    %23 = arith.mulf %18, %22 : vector<64x4xf32>
    %c0_10 = arith.constant 0 : index
    %c0_11 = arith.constant 0 : index
    %24 = vector.load %arg3[%c0_10, %c0_11] : memref<64x1xf32, #tpu.memory_space<vmem>>, vector<64x1xf32>
    %25 = vector.broadcast %24 : vector<64x1xf32> to vector<64x4xf32>
    %26 = arith.mulf %23, %25 : vector<64x4xf32>
    %c0_12 = arith.constant 0 : index
    %c0_13 = arith.constant 0 : index
    %27 = vector.load %arg4[%c0_12, %c0_13] : memref<64x1xf32, #tpu.memory_space<vmem>>, vector<64x1xf32>
    %28 = vector.broadcast %27 : vector<64x1xf32> to vector<64x4xf32>
    %29 = arith.addf %26, %28 : vector<64x4xf32>
    %cst_14 = arith.constant 0.000000e+00 : f32
    %30 = vector.broadcast %cst_14 : f32 to vector<64x4xf32>
    %31 = arith.cmpf ogt, %29, %30 : vector<64x4xf32>
    %cst_15 = arith.constant 2.000000e-01 : f32
    %32 = vector.broadcast %cst_15 : f32 to vector<64x4xf32>
    %33 = arith.mulf %32, %29 : vector<64x4xf32>
    %34 = arith.select %31, %29, %33 : vector<64x4xi1>, vector<64x4xf32>
    %cst_16 = arith.constant dense<0xFF800000> : vector<64xf32>
    %35 = vector.multi_reduction <maximumf>, %34, %cst_16 [1] : vector<64x4xf32> to vector<64xf32>
    %36 = vector.shape_cast %35 : vector<64xf32> to vector<64x1xf32>
    %c0_17 = arith.constant 0 : index
    %c0_18 = arith.constant 0 : index
    %37 = vector.load %arg5[%c0_17, %c0_18] : memref<32x64xbf16, #tpu.memory_space<vmem>>, vector<32x64xbf16>
    %38 = arith.truncf %36 : vector<64x1xf32> to vector<64x1xbf16>
    %cst_19 = arith.constant dense<0.000000e+00> : vector<32x1xf32>
    %39 = tpu.matmul %37, %38, %cst_19 {dimension_numbers = #tpu.dot_dimension_numbers<[1], [0], [0], [1], [0, 0, 1, 1], [], []>} : vector<32x64xbf16>, vector<64x1xbf16>, vector<32x1xf32> -> vector<32x1xf32>
    %c0_20 = arith.constant 0 : index
    %c0_21 = arith.constant 0 : index
    %40 = vector.load %arg6[%c0_20, %c0_21] : memref<32x1xf32, #tpu.memory_space<vmem>>, vector<32x1xf32>
    %41 = arith.addf %39, %40 : vector<32x1xf32>
    %cst_22 = arith.constant 0.000000e+00 : f32
    %42 = vector.broadcast %cst_22 : f32 to vector<32x1xf32>
    %43 = arith.cmpf ogt, %41, %42 : vector<32x1xf32>
    %cst_23 = arith.constant 2.000000e-01 : f32
    %44 = vector.broadcast %cst_23 : f32 to vector<32x1xf32>
    %45 = arith.mulf %44, %41 : vector<32x1xf32>
    %46 = arith.select %43, %41, %45 : vector<32x1xi1>, vector<32x1xf32>
    %c0_24 = arith.constant 0 : index
    %c0_25 = arith.constant 0 : index
    %47 = vector.load %arg7[%c0_24, %c0_25] : memref<1x32xbf16, #tpu.memory_space<vmem>>, vector<1x32xbf16>
    %48 = arith.truncf %46 : vector<32x1xf32> to vector<32x1xbf16>
    %cst_26 = arith.constant dense<0.000000e+00> : vector<1x1xf32>
    %49 = tpu.matmul %47, %48, %cst_26 {dimension_numbers = #tpu.dot_dimension_numbers<[1], [0], [0], [1], [0, 0, 1, 1], [], []>} : vector<1x32xbf16>, vector<32x1xbf16>, vector<1x1xf32> -> vector<1x1xf32>
    %c0_27 = arith.constant 0 : index
    %c0_28 = arith.constant 0 : index
    %50 = vector.load %arg8[%c0_27, %c0_28] : memref<1x1xf32, #tpu.memory_space<vmem>>, vector<1x1xf32>
    %51 = arith.addf %49, %50 : vector<1x1xf32>
    %52 = arith.negf %51 : vector<1x1xf32>
    %53 = math.exp %52 : vector<1x1xf32>
    %cst_29 = arith.constant 1.000000e+00 : f32
    %54 = vector.broadcast %cst_29 : f32 to vector<1x1xf32>
    %55 = arith.addf %54, %53 : vector<1x1xf32>
    %56 = arith.divf %54, %55 : vector<1x1xf32>
    %c0_30 = arith.constant 0 : index
    %c0_31 = arith.constant 0 : index
    %c0_32 = arith.constant 0 : index
    %57 = vector.load %arg9[%c0_30, %c0_31, %c0_32] : memref<1x1x1xf32, #tpu.memory_space<vmem>>, vector<1x1x1xf32>
    %58 = vector.shape_cast %57 : vector<1x1x1xf32> to vector<1x1xf32>
    %59 = vector.shape_cast %56 : vector<1x1xf32> to vector<1x1x1xf32>
    tpu.vector_store %arg9[%c0_30, %c0_31, %c0_32], %59 {strides = array<i32>} : memref<1x1x1xf32, #tpu.memory_space<vmem>>, vector<1x1x1xf32>,
    return
  }
  func.func @transform_0(%arg0: i32) -> (i32, i32, i32) {
    %c0_i32 = arith.constant 0 : i32
    %c0_i32_0 = arith.constant 0 : i32
    %c0_i32_1 = arith.constant 0 : i32
    return %arg0, %c0_i32, %c0_i32_0 : i32, i32, i32
  }
  func.func @transform_1(%arg0: i32) -> (i32, i32) {
    %c0_i32 = arith.constant 0 : i32
    %c0_i32_0 = arith.constant 0 : i32
    %c0_i32_1 = arith.constant 0 : i32
    return %c0_i32, %c0_i32_0 : i32, i32
  }
  func.func @transform_2(%arg0: i32) -> (i32, i32) {
    %c0_i32 = arith.constant 0 : i32
    %c0_i32_0 = arith.constant 0 : i32
    %c0_i32_1 = arith.constant 0 : i32
    return %c0_i32, %c0_i32_0 : i32, i32
  }
  func.func @transform_3(%arg0: i32) -> (i32, i32) {
    %c0_i32 = arith.constant 0 : i32
    %c0_i32_0 = arith.constant 0 : i32
    %c0_i32_1 = arith.constant 0 : i32
    return %c0_i32, %c0_i32_0 : i32, i32
  }
  func.func @transform_4(%arg0: i32) -> (i32, i32) {
    %c0_i32 = arith.constant 0 : i32
    %c0_i32_0 = arith.constant 0 : i32
    %c0_i32_1 = arith.constant 0 : i32
    return %c0_i32, %c0_i32_0 : i32, i32
  }
  func.func @transform_5(%arg0: i32) -> (i32, i32) {
    %c0_i32 = arith.constant 0 : i32
    %c0_i32_0 = arith.constant 0 : i32
    %c0_i32_1 = arith.constant 0 : i32
    return %c0_i32, %c0_i32_0 : i32, i32
  }
  func.func @transform_6(%arg0: i32) -> (i32, i32) {
    %c0_i32 = arith.constant 0 : i32
    %c0_i32_0 = arith.constant 0 : i32
    %c0_i32_1 = arith.constant 0 : i32
    return %c0_i32, %c0_i32_0 : i32, i32
  }
  func.func @transform_7(%arg0: i32) -> (i32, i32) {
    %c0_i32 = arith.constant 0 : i32
    %c0_i32_0 = arith.constant 0 : i32
    %c0_i32_1 = arith.constant 0 : i32
    return %c0_i32, %c0_i32_0 : i32, i32
  }
  func.func @transform_8(%arg0: i32) -> (i32, i32, i32) {
    %c0_i32 = arith.constant 0 : i32
    %c0_i32_0 = arith.constant 0 : i32
    %c0_i32_1 = arith.constant 0 : i32
    return %arg0, %c0_i32, %c0_i32_0 : i32, i32, i32
  }
}

</mosaic_0001>

<bundles_post_ra>
// kernel: discriminator_forward.4
= control target key start
LH: loop header
LB: loop body
LE: loop exit
PB: predicated region body
PF: predicated region fallthrough
CT: control target
= control target key end

     0   :  { %s448_s15 = smov 0   ;;  %s478_s0 = inlined_call_operand.vmem [shape: bf16[2,32,256], index: 0, kind: input, shape index: {}]   ;;  %s479_s1 = inlined_call_operand.vmem [shape: bf16[8,32], index: 1, kind: input, shape index: {}]   ;;  %s480_s2 = inlined_call_operand.vmem [shape: f32[8,1], index: 2, kind: input, shape index: {}]   ;;  %s481_s3 = inlined_call_operand.vmem [shape: f32[8,1], index: 3, kind: input, shape index: {}]   ;;  %s482_s4 = inlined_call_operand.vmem [shape: bf16[2,8,256], index: 4, kind: output, shape index: {}]  }
   0x1 LB: > { %s375_s16 = sadd.s32 4294967295, %s420_s15   ;;  %p379_p0 = scmp.ge.s32.totalorder %s420_s15, 1  ;;  %s420_s15 = sphi %s448_s15, %s14_s15  }
   0x2   : > { %p162_p1 = scmp.lt.s32.totalorder %s420_s15, 3 }
   0x4   : > { %p163_p2 = pnand %p379_p0, %p162_p1 }
   0x5   : > { %p188_p3 = scmp.lt.s32.totalorder (!%p163_p2), %s375_s16, 1  ;;  %v422_v0 = vmov (!%p163_p2), 0   ;;  %v199_v5 = vld [vmem:[%s479_s1] sm:$0xf] (!%p163_p2)  ;;  %vm224_vm0 = vcmask (!%p163_p2), 261120  }
   0x6   : > { %166 = sbr.rel (%p163_p2) target bundleno = 417 (0x1a1), region = 36  ;;  %260 = vmatprep.mubr.bf16.mxu0 (!%p163_p2), %v422_v0  ;;  %404 = vset.pattern.permute.xlu1 (!%p163_p2), %v422_v0  ;;  %v289_v6 = vld [vmem:[%s480_s2] sm:$0xff] (!%p163_p2) }
   0x7   : > { %405 = vset.pattern.permute.xlu0 (!%p163_p2), %v422_v0  ;;  %292 = vperm.xlu1 (!%p163_p2), %404, %v289_v6   ;;  %v297_v7 = vld [vmem:[%s481_s3] sm:$0xff] (!%p163_p2) }
   0xb   : > { %300 = vperm.xlu1 (!%p163_p2), %404, %v297_v7  }
   0xd   : > { %s484_s16 = smov (!%p188_p3, %s375_s16), 1 }
   0xe   : > { %s392_s17 = sshll.u32 %s484_s16, 5  ;;  %s393_s27 = sshll.u32 %s484_s16, 3 }
   0xf   : > { %s192_s20 = scalar_lea.vmem %s478_s0, %s392_s17  ;;  %s197_s30 = scalar_lea.vmem %s482_s4, %s393_s27 }
  0x10   : > { %v406_v1 = vld [vmem:[%s192_s20 + $0x4] ss:$8 sps:$4 sm:$0xff]   ;;  %v408_v2 = vld [vmem:[%s192_s20] ss:$8 sps:$4 sm:$0xff]   ;;  %v409_v3 = vld [vmem:[%s192_s20 + $0x14] ss:$8 sps:$4 sm:$0xff]  }
  0x11   : > { %228 = vmatprep.subr.bf16.mxu0 %v406_v1  ;;  %v411_v4 = vld [vmem:[%s192_s20 + $0x10] ss:$8 sps:$4 sm:$0xff]  }
  0x12   : > { %229 = vmatpush1.bf16.msra.mxu0 %v408_v2 }
  0x13   : > { %230 = vmatprep.subr.bf16.mxu0 %v409_v3 }
  0x16   : > { %231 = vmatpush1.bf16.msra.mxu0 %v411_v4 }
  0x19   : > { %388 = vmatmul.mubr.msk.bf16.vlgmr.msra.gmra.mrb[0].mxu0 %vm224_vm0, %v199_v5 }
  0x86   : > { %v293_v24 = vpop.permute.xlu1 %292 }
  0x8a   : > { %v301_v32 = vpop.permute.xlu1 %300 }
  0xec   : > { %v262_v8 = vpop.f32.mrb[0].mxu0 }
  0xed   : > { %v264_v9 = vpop.f32.mrb[1].mxu0  ;;  %v274_v10 = vmul.f32 %v262_v8, %v262_v8 }
  0xee   : > { %v266_v11 = vpop.f32.mrb[2].mxu0  ;;  %v269_v12 = vadd.f32 %v264_v9, %v262_v8  ;;  %v275_v13 = vmul.f32 %v264_v9, %v264_v9 }
  0xef   : > { %v267_v14 = vpop.f32.mrb[3].mxu0 }
  0xf0   : > { %270 = vadd.xlane.f32.xlu0 %v269_v12  ;;  %v276_v15 = vadd.f32 %v275_v13, %v274_v10 }
  0xf4   : > { %277 = vadd.xlane.f32.xlu0 %v276_v15 }
 0x17d   : > { %v271_v16 = vpop.xlane.xlu0 %270 }
 0x17e   : > { %v273_v17 = vmul.f32 0.00390625, %v271_v16 }
 0x180   : > { %v280_v19 = vmul.f32 %v273_v17, %v273_v17  ;;  %v283_v25 = vsub.f32 %v262_v8, %v273_v17  ;;  %v284_v26 = vsub.f32 %v264_v9, %v273_v17 }
 0x181   : > { %v278_v18 = vpop.xlane.xlu0 %277 }
 0x182   : > { %v279_v20 = vmul.f32 0.00390625, %v278_v18 }
 0x184   : > { %v281_v21 = vsub.f32 %v279_v20, %v280_v19 }
 0x186   : > { %v282_v22 = vmax.f32 %v281_v21, 0.0 }
 0x188   : > { %v285_v23 = vadd.f32 1e-05, %v282_v22 }
 0x18a   : > { %412 = vrsqrt.f32 %v285_v23 }
 0x194   : > { %v413_v27 = vpop.eup %412 }
 0x195   : > { %v287_v28 = vmul.f32 %v413_v27, %v283_v25  ;;  %v288_v29 = vmul.f32 %v413_v27, %v284_v26 }
 0x197   : > { %v295_v30 = vmul.f32 %v293_v24, %v287_v28  ;;  %v296_v31 = vmul.f32 %v293_v24, %v288_v29 }
 0x199   : > { %v303_v33 = vadd.f32 %v301_v32, %v295_v30  ;;  %v304_v34 = vadd.f32 %v301_v32, %v296_v31 }
 0x19b   : > { %vm305_vm1 = vcmp.gt.f32.partialorder %v303_v33, 0.0  ;;  %vm306_vm2 = vcmp.gt.f32.partialorder %v304_v34, 0.0  ;;  %v307_v35 = vmul.f32 0.2, %v303_v33  ;;  %v308_v36 = vmul.f32 0.2, %v304_v34 }
 0x19d   : > { %v309_v37 = vsel %vm305_vm1, %v303_v33, %v307_v35  ;;  %v310_v38 = vsel %vm306_vm2, %v304_v34, %v308_v36 }
 0x19e   : > { %v394_v39 = vpack.c.bf16 %v310_v38, %v309_v37 }
 0x1a0   : > { %319 = vst [vmem:[%s197_s30] sm:$0xff] %v394_v39 }
 0x1a1 PF: > { %s14_s15 = sadd.s32 1, %s420_s15  }
 0x1a2   : > { %p11_p4 = scmp.ge.s32.totalorder %s14_s15, 4  }
 0x1a4   :  { %13 = sbr.rel (!%p11_p4) target bundleno = 1 (0x1), region = 66 }

// kernel: discriminator_forward.5
= control target key start
LH: loop header
LB: loop body
LE: loop exit
PB: predicated region body
PF: predicated region fallthrough
CT: control target
= control target key end

     0   :  { %s563_s15 = smov 0   ;;  %s599_s0 = inlined_call_operand.vmem [shape: bf16[2,128,64], index: 0, kind: input, shape index: {}]   ;;  %s600_s1 = inlined_call_operand.vmem [shape: bf16[16,128], index: 1, kind: input, shape index: {}]   ;;  %s601_s2 = inlined_call_operand.vmem [shape: f32[16,1], index: 2, kind: input, shape index: {}]   ;;  %s602_s3 = inlined_call_operand.vmem [shape: f32[16,1], index: 3, kind: input, shape index: {}]   ;;  %s603_s4 = inlined_call_operand.vmem [shape: bf16[2,16,64], index: 4, kind: output, shape index: {}]  }
   0x1 LB: > { %s446_s16 = sadd.s32 4294967295, %s533_s15   ;;  %p450_p0 = scmp.ge.s32.totalorder %s533_s15, 1  ;;  %s533_s15 = sphi %s563_s15, %s14_s15  }
   0x2   : > { %p162_p1 = scmp.lt.s32.totalorder %s533_s15, 3 }
   0x4   : > { %p163_p2 = pnand %p450_p0, %p162_p1 }
   0x5   : > { %p188_p3 = scmp.lt.s32.totalorder (!%p163_p2), %s446_s16, 1  ;;  %v535_v0 = vmov (!%p163_p2), 0.0   ;;  %vm536_vm0 = vmmov (!%p163_p2), 0   ;;  %v347_v1 = vld [vmem:[%s601_s2 + $0x8] sm:$0xff] (!%p163_p2)  ;;  %v537_v2 = vmov (!%p163_p2), 0   ;;  %v360_v3 = vld [vmem:[%s602_s3] sm:$0xff] (!%p163_p2) }
   0x6   : > { %166 = sbr.rel (%p163_p2) target bundleno = 440 (0x1b8), region = 36  ;;  %481 = vmatprep.subr.bf16.mxu0 (!%p163_p2), %v535_v0  ;;  %497 = vmatprep.mubr.msk.bf16.mxu0 (!%p163_p2), %vm536_vm0, %v535_v0  ;;  %v522_v12 = vld [vmem:[%s600_s1] sm:$0xff] (!%p163_p2)   ;;  %vm312_vm1 = vcmask (!%p163_p2), 523264   ;;  %v361_v23 = vld [vmem:[%s602_s3 + $0x8] sm:$0xff] (!%p163_p2)  ;;  %vm388_vm3 = vcmask (!%p163_p2), 519168  }
   0x7   : > { %513 = vset.pattern.permute.xlu1 (!%p163_p2), %v537_v2  ;;  %512 = vset.pattern.permute.xlu0 (!%p163_p2), %v537_v2  ;;  %v346_v24 = vld [vmem:[%s601_s2] sm:$0xff] (!%p163_p2) }
   0x8   : > { %355 = vperm.xlu1 (!%p163_p2), %513, %v347_v1  }
   0xc   : > { %364 = vperm.xlu1 (!%p163_p2), %513, %v360_v3  }
   0xd   : > { %s605_s16 = smov (!%p188_p3, %s446_s16), 1 }
   0xe   : > { %s468_s19 = sshll.u32 %s605_s16, 6  ;;  %s469_s5 = sshll.u32 %s605_s16, 3 }
   0xf   : > { %s192_s24 = scalar_lea.vmem %s599_s0, %s468_s19  ;;  %s197_s8 = scalar_lea.vmem %s603_s4, %s469_s5 }
  0x10   : > { %v514_v4 = vld [vmem:[%s192_s24] sm:$0xff]   ;;  %v515_v5 = vld [vmem:[%s192_s24 + $0x8] sm:$0xff]   ;;  %v516_v6 = vld [vmem:[%s192_s24 + $0x10] sm:$0xff]  }
  0x11   : > { %482 = vmatpush3.bf16.msra.mxu0 %v514_v4  ;;  %v517_v7 = vld [vmem:[%s192_s24 + $0x18] sm:$0xff]   ;;  %v518_v8 = vld [vmem:[%s192_s24 + $0x20] sm:$0xff]   ;;  %v519_v9 = vld [vmem:[%s192_s24 + $0x28] sm:$0xff]  }
  0x12   : > { %483 = vmatprep.subr.bf16.mxu0 %v535_v0  ;;  %v520_v10 = vld [vmem:[%s192_s24 + $0x30] sm:$0xff]   ;;  %v521_v11 = vld [vmem:[%s192_s24 + $0x38] sm:$0xff]  }
  0x15   : > { %484 = vmatpush3.bf16.msra.mxu0 %v515_v5 }
  0x16   : > { %485 = vmatprep.subr.bf16.mxu0 %v535_v0 }
  0x19   : > { %486 = vmatpush3.bf16.msra.mxu0 %v516_v6 }
  0x1a   : > { %487 = vmatprep.subr.bf16.mxu0 %v535_v0 }
  0x1d   : > { %488 = vmatpush3.bf16.msra.mxu0 %v517_v7 }
  0x1e   : > { %489 = vmatprep.subr.bf16.mxu0 %v535_v0 }
  0x21   : > { %490 = vmatpush3.bf16.msra.mxu0 %v518_v8 }
  0x22   : > { %491 = vmatprep.subr.bf16.mxu0 %v535_v0 }
  0x25   : > { %492 = vmatpush3.bf16.msra.mxu0 %v519_v9 }
  0x26   : > { %493 = vmatprep.subr.bf16.mxu0 %v535_v0 }
  0x29   : > { %494 = vmatpush3.bf16.msra.mxu0 %v520_v10 }
  0x2a   : > { %495 = vmatprep.subr.bf16.mxu0 %v535_v0 }
  0x2d   : > { %496 = vmatpush3.bf16.msra.mxu0 %v521_v11 }
  0x30   : > { %498 = vmatmul.mubr.bf16.vlgmr.msra.gmra.mrb[0].mxu0 %v522_v12 }
  0x87   : > { %v356_v25 = vpop.permute.xlu1 %355 }
  0x8b   : > { %v365_v26 = vpop.permute.xlu1 %364 }
 0x103   : > { %v305_v13 = vpop.f32.mrb[0].mxu0 }
 0x104   : > { %v499_v14 = vpop.f32.mrb[1].mxu0  ;;  %v313_v15 = vsel %vm312_vm1, %v305_v13, 0.0  ;;  %v322_v16 = vmul.f32 %v305_v13, %v305_v13 }
 0x105   : > { %314 = vadd.xlane.f32.xlu0 %v313_v15  ;;  %v308_v17 = vpop.f32.mrb[2].mxu0 }
 0x106   : > { %v500_v18 = vpop.f32.mrb[3].mxu0  ;;  %v324_v19 = vsel %vm312_vm1, %v322_v16, 0.0  ;;  %v323_v20 = vmul.f32 %v308_v17, %v308_v17  ;;  %v316_v21 = vsel %vm312_vm1, %v308_v17, 0.0 }
 0x107   : > { %325 = vadd.xlane.f32.xlu1 %v324_v19 }
 0x108   : > { %v327_v22 = vsel %vm312_vm1, %v323_v20, 0.0 }
 0x109   : > { %317 = vadd.xlane.f32.xlu0 %v316_v21 }
 0x10b   : > { %328 = vadd.xlane.f32.xlu1 %v327_v22 }
 0x11c   : > { %369 = vperm.xlu1 %513, %v361_v23  }
 0x11f   : > { %350 = vperm.xlu0 %512, %v346_v24  }
 0x192   : > { %v315_v27 = vpop.xlane.xlu0 %314 }
 0x193   : > { %v320_v28 = vmul.f32 0.015625, %v315_v27 }
 0x194   : > { %v326_v29 = vpop.xlane.xlu1 %325 }
 0x195   : > { %v332_v30 = vmul.f32 %v320_v28, %v320_v28  ;;  %v330_v31 = vmul.f32 0.015625, %v326_v29  ;;  %v338_v43 = vsub.f32 %v305_v13, %v320_v28 }
 0x196   : > { %v318_v32 = vpop.xlane.xlu0 %317 }
 0x197   : > { %v334_v33 = vsub.f32 %v330_v31, %v332_v30  ;;  %v321_v34 = vmul.f32 0.015625, %v318_v32 }
 0x198   : > { %v329_v35 = vpop.xlane.xlu1 %328 }
 0x199   : > { %v336_v36 = vmax.f32 %v334_v33, 0.0  ;;  %v333_v37 = vmul.f32 %v321_v34, %v321_v34  ;;  %v331_v38 = vmul.f32 0.015625, %v329_v35  ;;  %v339_v47 = vsub.f32 %v308_v17, %v321_v34 }
 0x19b   : > { %v340_v39 = vadd.f32 1e-05, %v336_v36  ;;  %v335_v40 = vsub.f32 %v331_v38, %v333_v37 }
 0x19c   : > { %v370_v54 = vpop.permute.xlu1 %369 }
 0x19d   : > { %523 = vrsqrt.f32 %v340_v39  ;;  %v337_v41 = vmax.f32 %v335_v40, 0.0 }
 0x19e   : > { %v351_v45 = vpop.permute.xlu0 %350 }
 0x19f   : > { %v341_v42 = vadd.f32 1e-05, %v337_v41 }
 0x1a1   : > { %525 = vrsqrt.f32 %v341_v42 }
 0x1a7   : > { %v524_v44 = vpop.eup %523 }
 0x1a8   : > { %v344_v46 = vmul.f32 %v524_v44, %v338_v43 }
 0x1aa   : > { %v358_v48 = vmul.f32 %v351_v45, %v344_v46 }
 0x1ab   : > { %v526_v49 = vpop.eup %525 }
 0x1ac   : > { %v345_v50 = vmul.f32 %v526_v49, %v339_v47  ;;  %v372_v51 = vadd.f32 %v365_v26, %v358_v48 }
 0x1ae   : > { %v359_v52 = vmul.f32 %v356_v25, %v345_v50  ;;  %vm374_vm2 = vcmp.gt.f32.partialorder %v372_v51, 0.0  ;;  %v376_v53 = vmul.f32 0.2, %v372_v51 }
 0x1b0   : > { %v373_v55 = vadd.f32 %v370_v54, %v359_v52  ;;  %v378_v56 = vsel %vm374_vm2, %v372_v51, %v376_v53 }
 0x1b1   : > { %v470_v57 = vpack.c.bf16 %v378_v56, %v378_v56 }
 0x1b2   : > { %vm375_vm4 = vcmp.gt.f32.partialorder %v373_v55, 0.0  ;;  %v377_v58 = vmul.f32 0.2, %v373_v55 }
 0x1b3   : > { %389 = vst.msk [vmem:[%s197_s8] sm:$0xf] %vm388_vm3, %v470_v57 }
 0x1b4   : > { %v379_v59 = vsel %vm375_vm4, %v373_v55, %v377_v58 }
 0x1b5   : > { %v471_v60 = vpack.c.bf16 %v379_v59, %v379_v59 }
 0x1b7   : > { %390 = vst.msk [vmem:[%s197_s8 + $0x4] sm:$0xf] %vm388_vm3, %v471_v60 }
 0x1b8 PF: > { %s14_s15 = sadd.s32 1, %s533_s15  }
 0x1b9   : > { %p11_p4 = scmp.ge.s32.totalorder %s14_s15, 4  }
 0x1bb   :  { %13 = sbr.rel (!%p11_p4) target bundleno = 1 (0x1), region = 66 }

// kernel: discriminator_forward.6
= control target key start
LH: loop header
LB: loop body
LE: loop exit
PB: predicated region body
PF: predicated region fallthrough
CT: control target
= control target key end

     0   :  { %s770_s15 = smov 0   ;;  %s890_s0 = inlined_call_operand.vmem [shape: bf16[2,256,16], index: 0, kind: input, shape index: {}]   ;;  %s891_s1 = inlined_call_operand.vmem [shape: bf16[32,256], index: 1, kind: input, shape index: {}]   ;;  %s892_s2 = inlined_call_operand.vmem [shape: f32[32,1], index: 2, kind: input, shape index: {}]   ;;  %s893_s3 = inlined_call_operand.vmem [shape: f32[32,1], index: 3, kind: input, shape index: {}]   ;;  %s894_s4 = inlined_call_operand.vmem [shape: bf16[2,32,16], index: 4, kind: output, shape index: {}]  }
   0x1 LB: > { %s610_s16 = sadd.s32 4294967295, %s742_s15   ;;  %p614_p0 = scmp.ge.s32.totalorder %s742_s15, 1  ;;  %s742_s15 = sphi %s770_s15, %s14_s15  }
   0x2   : > { %p162_p1 = scmp.lt.s32.totalorder %s742_s15, 3 }
   0x4   : > { %p163_p2 = pnand %p614_p0, %p162_p1 }
   0x5   : > { %p188_p3 = scmp.lt.s32.totalorder (!%p163_p2), %s610_s16, 1  ;;  %v724_v0 = vld [vmem:[%s891_s1 + $0x4] ss:$8 sps:$4 sm:$0xff] (!%p163_p2)   ;;  %v727_v1 = vld [vmem:[%s891_s1 + $0x14] ss:$8 sps:$4 sm:$0xff] (!%p163_p2)   ;;  %v744_v20 = vmov (!%p163_p2), 0  }
   0x6   : > { %166 = sbr.rel (%p163_p2) target bundleno = 519 (0x207), region = 36  ;;  %383 = vmatprep.mubr.bf16.mxu0 (!%p163_p2), %v724_v0  ;;  %391 = vmatprep.mubr.bf16.mxu1 (!%p163_p2), %v727_v1  ;;  %v722_v18 = vld [vmem:[%s891_s1] ss:$8 sps:$4 sm:$0xff] (!%p163_p2)   ;;  %v725_v19 = vld [vmem:[%s891_s1 + $0x10] ss:$8 sps:$4 sm:$0xff] (!%p163_p2)   ;;  %vm400_vm0 = vcmask (!%p163_p2), 130048  }
   0x7   : > { %705 = vset.pattern.permute.xlu1 (!%p163_p2), %v744_v20  ;;  %704 = vset.pattern.permute.xlu0 (!%p163_p2), %v744_v20  ;;  %v467_v41 = vld [vmem:[%s892_s2 + $0x8] sm:$0xff] (!%p163_p2)  ;;  %v468_v42 = vld [vmem:[%s892_s2 + $0x10] sm:$0xff] (!%p163_p2)  ;;  %v469_v43 = vld [vmem:[%s892_s2 + $0x18] sm:$0xff] (!%p163_p2)  ;;  %vm550_vm2 = vcmask (!%p163_p2), 125952  }
   0x8   : > { %v494_v44 = vld [vmem:[%s893_s3] sm:$0xff] (!%p163_p2)  ;;  %v495_v46 = vld [vmem:[%s893_s3 + $0x8] sm:$0xff] (!%p163_p2)  ;;  %v496_v47 = vld [vmem:[%s893_s3 + $0x10] sm:$0xff] (!%p163_p2) }
   0x9   : > { %v466_v45 = vld [vmem:[%s892_s2] sm:$0xff] (!%p163_p2)  ;;  %v497_v52 = vld [vmem:[%s893_s3 + $0x18] sm:$0xff] (!%p163_p2) }
   0xd   : > { %s896_s16 = smov (!%p188_p3, %s610_s16), 1 }
   0xe   : > { %s645_s21 = sshll.u32 %s896_s16, 7 }
   0xf   : > { %s790_s24 = scalar_lea.vmem %s890_s0, %s645_s21  ;;  %s646_s21 = sshll.u32 %s896_s16, 4 }
  0x10   : > { %v706_v2 = vld [vmem:[%s790_s24 + $0x40] sm:$0xff]   ;;  %v708_v4 = vld [vmem:[%s790_s24 + $0x48] sm:$0xff]   ;;  %v710_v6 = vld [vmem:[%s790_s24 + $0x50] sm:$0xff]  }
  0x11   : > { %v707_v3 = vld [vmem:[%s790_s24] sm:$0xff]   ;;  %651 = vmatprep.subr.bf16.mxu0 %v706_v2  ;;  %679 = vmatprep.subr.bf16.mxu1 %v706_v2  ;;  %v709_v5 = vld [vmem:[%s790_s24 + $0x8] sm:$0xff]   ;;  %v711_v7 = vld [vmem:[%s790_s24 + $0x10] sm:$0xff]  }
  0x12   : > { %652 = vmatpush3.bf16.msra.mxu0 %v707_v3  ;;  %687 = vmatpush3.bf16.msra.mxu1 %v707_v3  ;;  %v712_v8 = vld [vmem:[%s790_s24 + $0x58] sm:$0xff]   ;;  %v714_v10 = vld [vmem:[%s790_s24 + $0x60] sm:$0xff]   ;;  %v716_v12 = vld [vmem:[%s790_s24 + $0x68] sm:$0xff]  }
  0x13   : > { %653 = vmatprep.subr.bf16.mxu0 %v708_v4  ;;  %680 = vmatprep.subr.bf16.mxu1 %v708_v4  ;;  %v713_v9 = vld [vmem:[%s790_s24 + $0x18] sm:$0xff]   ;;  %v715_v11 = vld [vmem:[%s790_s24 + $0x20] sm:$0xff]   ;;  %v717_v13 = vld [vmem:[%s790_s24 + $0x28] sm:$0xff]  }
  0x14   : > { %v718_v14 = vld [vmem:[%s790_s24 + $0x70] sm:$0xff]   ;;  %v720_v16 = vld [vmem:[%s790_s24 + $0x78] sm:$0xff]  }
  0x15   : > { %v719_v15 = vld [vmem:[%s790_s24 + $0x30] sm:$0xff]   ;;  %v721_v17 = vld [vmem:[%s790_s24 + $0x38] sm:$0xff]   ;;  %s874_s24 = scalar_lea.vmem %s894_s4, %s646_s21 }
  0x16   : > { %654 = vmatpush3.bf16.msra.mxu0 %v709_v5  ;;  %688 = vmatpush3.bf16.msra.mxu1 %v709_v5 }
  0x17   : > { %655 = vmatprep.subr.bf16.mxu0 %v710_v6  ;;  %681 = vmatprep.subr.bf16.mxu1 %v710_v6 }
  0x1a   : > { %656 = vmatpush3.bf16.msra.mxu0 %v711_v7  ;;  %689 = vmatpush3.bf16.msra.mxu1 %v711_v7 }
  0x1b   : > { %657 = vmatprep.subr.bf16.mxu0 %v712_v8  ;;  %682 = vmatprep.subr.bf16.mxu1 %v712_v8 }
  0x1e   : > { %658 = vmatpush3.bf16.msra.mxu0 %v713_v9  ;;  %690 = vmatpush3.bf16.msra.mxu1 %v713_v9 }
  0x1f   : > { %659 = vmatprep.subr.bf16.mxu0 %v714_v10  ;;  %683 = vmatprep.subr.bf16.mxu1 %v714_v10 }
  0x22   : > { %660 = vmatpush3.bf16.msra.mxu0 %v715_v11  ;;  %691 = vmatpush3.bf16.msra.mxu1 %v715_v11 }
  0x23   : > { %661 = vmatprep.subr.bf16.mxu0 %v716_v12  ;;  %684 = vmatprep.subr.bf16.mxu1 %v716_v12 }
  0x26   : > { %662 = vmatpush3.bf16.msra.mxu0 %v717_v13  ;;  %692 = vmatpush3.bf16.msra.mxu1 %v717_v13 }
  0x27   : > { %663 = vmatprep.subr.bf16.mxu0 %v718_v14  ;;  %685 = vmatprep.subr.bf16.mxu1 %v718_v14 }
  0x2a   : > { %664 = vmatpush3.bf16.msra.mxu0 %v719_v15  ;;  %693 = vmatpush3.bf16.msra.mxu1 %v719_v15 }
  0x2b   : > { %665 = vmatprep.subr.bf16.mxu0 %v720_v16  ;;  %686 = vmatprep.subr.bf16.mxu1 %v720_v16 }
  0x2e   : > { %666 = vmatpush3.bf16.msra.mxu0 %v721_v17  ;;  %694 = vmatpush3.bf16.msra.mxu1 %v721_v17 }
  0x31   : > { %384 = vmatmul.mubr.bf16.vlgmr.msra.gmra.mrb[0].mxu0 %v722_v18  ;;  %392 = vmatmul.mubr.bf16.vlgmr.msra.gmra.mrb[0].mxu1 %v725_v19 }
 0x104   : > { %v667_v21 = vpop.f32.mrb[0].mxu0  ;;  %v673_v22 = vpop.f32.mrb[0].mxu1 }
 0x105   : > { %v668_v23 = vpop.f32.mrb[1].mxu0  ;;  %v674_v24 = vpop.f32.mrb[1].mxu1 }
 0x106   : > { %v814_v25 = vadd.f32 %v668_v23, %v667_v21  ;;  %v816_v26 = vadd.f32 %v674_v24, %v673_v22  ;;  %v676_v27 = vpop.f32.mrb[2].mxu1  ;;  %v670_v28 = vpop.f32.mrb[2].mxu0 }
 0x107   : > { %v677_v29 = vpop.f32.mrb[3].mxu1  ;;  %v671_v30 = vpop.f32.mrb[3].mxu0 }
 0x108   : > { %v818_v31 = vadd.f32 %v677_v29, %v676_v27  ;;  %v407_v32 = vsel %vm400_vm0, %v816_v26, 0.0  ;;  %v822_v33 = vadd.f32 %v671_v30, %v670_v28  ;;  %v401_v34 = vsel %vm400_vm0, %v814_v25, 0.0 }
 0x109   : > { %408 = vadd.xlane.f32.xlu1 %v407_v32  ;;  %402 = vadd.xlane.f32.xlu0 %v401_v34  ;;  %v418_v36 = vmul.f32 %v814_v25, %v814_v25  ;;  %v420_v39 = vmul.f32 %v816_v26, %v816_v26 }
 0x10a   : > { %v404_v35 = vsel %vm400_vm0, %v822_v33, 0.0  ;;  %v410_v37 = vsel %vm400_vm0, %v818_v31, 0.0  ;;  %v419_v48 = vmul.f32 %v822_v33, %v822_v33  ;;  %v421_v50 = vmul.f32 %v818_v31, %v818_v31 }
 0x10b   : > { %v422_v38 = vsel %vm400_vm0, %v418_v36, 0.0  ;;  %v428_v40 = vsel %vm400_vm0, %v420_v39, 0.0 }
 0x10c   : > { %v425_v49 = vsel %vm400_vm0, %v419_v48, 0.0  ;;  %v431_v51 = vsel %vm400_vm0, %v421_v50, 0.0 }
 0x10d   : > { %411 = vadd.xlane.f32.xlu1 %v410_v37  ;;  %405 = vadd.xlane.f32.xlu0 %v404_v35 }
 0x111   : > { %423 = vadd.xlane.f32.xlu0 %v422_v38 }
 0x115   : > { %429 = vadd.xlane.f32.xlu0 %v428_v40 }
 0x11e   : > { %477 = vperm.xlu1 %705, %v467_v41  }
 0x122   : > { %482 = vperm.xlu1 %705, %v468_v42  }
 0x126   : > { %487 = vperm.xlu1 %705, %v469_v43  }
 0x12a   : > { %500 = vperm.xlu1 %705, %v494_v44  }
 0x12b   : > { %472 = vperm.xlu0 %704, %v466_v45  }
 0x12e   : > { %505 = vperm.xlu1 %705, %v495_v46  }
 0x132   : > { %510 = vperm.xlu1 %705, %v496_v47  }
 0x156   : > { %426 = vadd.xlane.f32.xlu1 %v425_v49 }
 0x15a   : > { %432 = vadd.xlane.f32.xlu1 %v431_v51 }
 0x16b   : > { %515 = vperm.xlu1 %705, %v497_v52  }
 0x196   : > { %v409_v53 = vpop.xlane.xlu1 %408  ;;  %v403_v54 = vpop.xlane.xlu0 %402 }
 0x197   : > { %v414_v57 = vmul.f32 0.0625, %v403_v54  ;;  %v416_v61 = vmul.f32 0.0625, %v409_v53 }
 0x199   : > { %v438_v58 = vmul.f32 %v414_v57, %v414_v57  ;;  %v440_v2 = vmul.f32 %v416_v61, %v416_v61  ;;  %v450_v11 = vsub.f32 %v814_v25, %v414_v57  ;;  %v452_v16 = vsub.f32 %v816_v26, %v416_v61 }
 0x19a   : > { %v412_v55 = vpop.xlane.xlu1 %411  ;;  %v406_v56 = vpop.xlane.xlu0 %405 }
 0x19b   : > { %v415_v30 = vmul.f32 0.0625, %v406_v56  ;;  %v417_v34 = vmul.f32 0.0625, %v412_v55 }
 0x19d   : > { %v439_v35 = vmul.f32 %v415_v30, %v415_v30  ;;  %v441_v39 = vmul.f32 %v417_v34, %v417_v34  ;;  %v451_v46 = vsub.f32 %v822_v33, %v415_v30  ;;  %v453_v49 = vsub.f32 %v818_v31, %v417_v34 }
 0x19e   : > { %v866_v59 = vpop.permute.xlu1 %477  ;;  %v424_v60 = vpop.xlane.xlu0 %423 }
 0x19f   : > { %v434_v62 = vmul.f32 0.0625, %v424_v60 }
 0x1a1   : > { %v442_v63 = vsub.f32 %v434_v62, %v438_v58 }
 0x1a2   : > { %v483_v0 = vpop.permute.xlu1 %482  ;;  %v430_v1 = vpop.xlane.xlu0 %429 }
 0x1a3   : > { %v446_v3 = vmax.f32 %v442_v63, 0.0  ;;  %v436_v4 = vmul.f32 0.0625, %v430_v1 }
 0x1a5   : > { %v454_v5 = vadd.f32 1e-05, %v446_v3  ;;  %v444_v6 = vsub.f32 %v436_v4, %v440_v2 }
 0x1a6   : > { %v488_v8 = vpop.permute.xlu1 %487 }
 0x1a7   : > { %728 = vrsqrt.f32 %v454_v5  ;;  %v448_v7 = vmax.f32 %v444_v6, 0.0 }
 0x1a9   : > { %v456_v9 = vadd.f32 1e-05, %v448_v7 }
 0x1aa   : > { %v501_v10 = vpop.permute.xlu1 %500  ;;  %v473_v13 = vpop.permute.xlu0 %472 }
 0x1ab   : > { %730 = vrsqrt.f32 %v456_v9 }
 0x1ae   : > { %v506_v15 = vpop.permute.xlu1 %505 }
 0x1b1   : > { %v729_v12 = vpop.eup %728 }
 0x1b2   : > { %v462_v14 = vmul.f32 %v729_v12, %v450_v11  ;;  %v511_v23 = vpop.permute.xlu1 %510 }
 0x1b4   : > { %v490_v17 = vmul.f32 %v473_v13, %v462_v14 }
 0x1b5   : > { %v731_v18 = vpop.eup %730 }
 0x1b6   : > { %v464_v19 = vmul.f32 %v731_v18, %v452_v16  ;;  %v518_v20 = vadd.f32 %v501_v10, %v490_v17 }
 0x1b8   : > { %v492_v21 = vmul.f32 %v483_v0, %v464_v19  ;;  %vm522_vm1 = vcmp.gt.f32.partialorder %v518_v20, 0.0  ;;  %v526_v22 = vmul.f32 0.2, %v518_v20 }
 0x1ba   : > { %v520_v24 = vadd.f32 %v511_v23, %v492_v21  ;;  %v530_v25 = vsel %vm522_vm1, %v518_v20, %v526_v22 }
 0x1bb   : > { %v647_v26 = vpack.c.bf16 %v530_v25, %v530_v25 }
 0x1bc   : > { %vm524_vm3 = vcmp.gt.f32.partialorder %v520_v24, 0.0  ;;  %v528_v27 = vmul.f32 0.2, %v520_v24 }
 0x1bd   : > { %551 = vst.msk [vmem:[%s874_s24] sm:$0xf] %vm550_vm2, %v647_v26 }
 0x1be   : > { %v532_v28 = vsel %vm524_vm3, %v520_v24, %v528_v27 }
 0x1bf   : > { %v649_v29 = vpack.c.bf16 %v532_v28, %v532_v28 }
 0x1c1   : > { %553 = vst.msk [vmem:[%s874_s24 + $0x8] sm:$0xf] %vm550_vm2, %v649_v29 }
 0x1e3   : > { %v427_v32 = vpop.xlane.xlu1 %426 }
 0x1e4   : > { %v435_v36 = vmul.f32 0.0625, %v427_v32 }
 0x1e6   : > { %v443_v37 = vsub.f32 %v435_v36, %v439_v35 }
 0x1e7   : > { %v433_v38 = vpop.xlane.xlu1 %432 }
 0x1e8   : > { %v447_v40 = vmax.f32 %v443_v37, 0.0  ;;  %v437_v41 = vmul.f32 0.0625, %v433_v38 }
 0x1ea   : > { %v455_v42 = vadd.f32 1e-05, %v447_v40  ;;  %v445_v43 = vsub.f32 %v437_v41, %v441_v39 }
 0x1eb   : > { %v516_v56 = vpop.permute.xlu1 %515 }
 0x1ec   : > { %732 = vrsqrt.f32 %v455_v42  ;;  %v449_v44 = vmax.f32 %v445_v43, 0.0 }
 0x1ee   : > { %v457_v45 = vadd.f32 1e-05, %v449_v44 }
 0x1f0   : > { %734 = vrsqrt.f32 %v457_v45 }
 0x1f6   : > { %v733_v47 = vpop.eup %732 }
 0x1f7   : > { %v463_v48 = vmul.f32 %v733_v47, %v451_v46 }
 0x1f9   : > { %v491_v50 = vmul.f32 %v866_v59, %v463_v48 }
 0x1fa   : > { %v735_v51 = vpop.eup %734 }
 0x1fb   : > { %v519_v52 = vadd.f32 %v506_v15, %v491_v50  ;;  %v465_v53 = vmul.f32 %v735_v51, %v453_v49 }
 0x1fd   : > { %vm523_vm4 = vcmp.gt.f32.partialorder %v519_v52, 0.0  ;;  %v527_v54 = vmul.f32 0.2, %v519_v52  ;;  %v493_v55 = vmul.f32 %v488_v8, %v465_v53 }
 0x1ff   : > { %v531_v57 = vsel %vm523_vm4, %v519_v52, %v527_v54  ;;  %v521_v58 = vadd.f32 %v516_v56, %v493_v55 }
 0x200   : > { %v648_v60 = vpack.c.bf16 %v531_v57, %v531_v57 }
 0x201   : > { %vm525_vm5 = vcmp.gt.f32.partialorder %v521_v58, 0.0  ;;  %v529_v33 = vmul.f32 0.2, %v521_v58 }
 0x202   : > { %552 = vst.msk [vmem:[%s874_s24 + $0x4] sm:$0xf] %vm550_vm2, %v648_v60 }
 0x203   : > { %v533_v61 = vsel %vm525_vm5, %v521_v58, %v529_v33 }
 0x204   : > { %v650_v62 = vpack.c.bf16 %v533_v61, %v533_v61 }
 0x206   : > { %554 = vst.msk [vmem:[%s874_s24 + $0xc] sm:$0xf] %vm550_vm2, %v650_v62 }
 0x207 PF: > { %s14_s15 = sadd.s32 1, %s742_s15  }
 0x208   : > { %p11_p4 = scmp.ge.s32.totalorder %s14_s15, 4  }
 0x20a   :  { %13 = sbr.rel (!%p11_p4) target bundleno = 1 (0x1), region = 66 }

// kernel: discriminator_forward.7
= control target key start
LH: loop header
LB: loop body
LE: loop exit
PB: predicated region body
PF: predicated region fallthrough
CT: control target
= control target key end

     0   :  { %s1593_s29 = smov 0   ;;  %s1908_s0 = inlined_call_operand.vmem [shape: bf16[2,512,4], index: 0, kind: input, shape index: {}]   ;;  %s1909_s1 = inlined_call_operand.vmem [shape: bf16[64,512], index: 1, kind: input, shape index: {}]   ;;  %s1910_s2 = inlined_call_operand.vmem [shape: f32[64,1], index: 2, kind: input, shape index: {}]   ;;  %s1911_s3 = inlined_call_operand.vmem [shape: f32[64,1], index: 3, kind: input, shape index: {}]   ;;  %s1912_s4 = inlined_call_operand.vmem [shape: bf16[32,64], index: 4, kind: input, shape index: {}]   ;;  %s1913_s5 = inlined_call_operand.vmem [shape: f32[32,1], index: 5, kind: input, shape index: {}]   ;;  %s1914_s6 = inlined_call_operand.vmem [shape: bf16[1,32], index: 6, kind: input, shape index: {}]   ;;  %s1915_s7 = inlined_call_operand.<no memory space> [shape: f32[1,1], index: 7, kind: input, shape index: {}]   ;;  %s1916_s8 = inlined_call_operand.vmem [shape: f32[2,1,1], index: 8, kind: output, shape index: {}]  }
   0x1   :  { %v13_v0 = vstv %s1915_s7 }
   0x2   :  { %14 = vst [vmem:[#allocation2] sm:$0x1] %v13_v0 }
   0x3 LB: > { %s1270_s30 = sadd.s32 4294967295, %s1540_s29   ;;  %p1274_p0 = scmp.ge.s32.totalorder %s1540_s29, 1  ;;  %s1540_s29 = sphi %s1593_s29, %s20_s29  }
   0x4   : > { %p264_p1 = scmp.lt.s32.totalorder %s1540_s29, 3 }
   0x6   : > { %p265_p2 = pnand %p1274_p0, %p264_p1 }
   0x7   : > { %p296_p3 = scmp.lt.s32.totalorder (!%p265_p2), %s1270_s30, 1  ;;  %v1490_v1 = vld [vmem:[%s1909_s1 + $0x4] ss:$16 sps:$4 sm:$0xff] (!%p265_p2)   ;;  %v1542_v2 = vmov (!%p265_p2), 0   ;;  %v1493_v3 = vld [vmem:[%s1909_s1 + $0xc] ss:$16 sps:$4 sm:$0xff] (!%p265_p2)  }
   0x8   : > { %268 = sbr.rel (%p265_p2) target bundleno = 1090 (0x442), region = 52  ;;  %1455 = vset.pattern.permute.xlu1 (!%p265_p2), %v1542_v2  ;;  %1454 = vset.pattern.permute.xlu0 (!%p265_p2), %v1542_v2  ;;  %v1488_v34 = vld [vmem:[%s1909_s1] ss:$16 sps:$4 sm:$0xff] (!%p265_p2)   ;;  %v1491_v36 = vld [vmem:[%s1909_s1 + $0x8] ss:$16 sps:$4 sm:$0xff] (!%p265_p2)   ;;  %vm787_vm0 = vcmask (!%p265_p2), 31744  }
   0x9   : > { %689 = vmatprep.mubr.bf16.mxu0 (!%p265_p2), %v1490_v1  ;;  %754 = vmatprep.mubr.bf16.mxu1 (!%p265_p2), %v1493_v3  ;;  %v1494_v38 = vld [vmem:[%s1909_s1 + $0x24] ss:$16 sps:$4 sm:$0xff] (!%p265_p2)   ;;  %v1496_v39 = vld [vmem:[%s1909_s1 + $0x2c] ss:$16 sps:$4 sm:$0xff] (!%p265_p2)   ;;  %v1498_v42 = vld [vmem:[%s1909_s1 + $0x20] ss:$16 sps:$4 sm:$0xff] (!%p265_p2)  }
   0xa   : > { %v918_v40 = vld [vmem:[%s1910_s2 + $0x8] sm:$0xff] (!%p265_p2)  ;;  %v973_v41 = vld [vmem:[%s1911_s3] sm:$0xff] (!%p265_p2)  ;;  %v919_v49 = vld [vmem:[%s1910_s2 + $0x10] sm:$0xff] (!%p265_p2)  ;;  %vm1099_vm9 = vcmask (!%p265_p2), 523264   ;;  %vm1544_vm10 = vmmov (!%p265_p2), 0   ;;  %vm1171_vm15 = vcmask (!%p265_p2), 261120  }
   0xb   : > { %932 = vperm.xlu1 (!%p265_p2), %1455, %v918_v40   ;;  %v1499_v43 = vld [vmem:[%s1909_s1 + $0x28] ss:$16 sps:$4 sm:$0xff] (!%p265_p2)   ;;  %v1500_v44 = vld [vmem:[%s1909_s1 + $0x44] ss:$16 sps:$4 sm:$0xff] (!%p265_p2)   ;;  %v1502_v46 = vld [vmem:[%s1909_s1 + $0x4c] ss:$16 sps:$4 sm:$0xff] (!%p265_p2)  }
   0xc   : > { %v917_v45 = vld [vmem:[%s1910_s2] sm:$0xff] (!%p265_p2)  ;;  %v974_v47 = vld [vmem:[%s1911_s3 + $0x8] sm:$0xff] (!%p265_p2)  ;;  %v920_v55 = vld [vmem:[%s1910_s2 + $0x18] sm:$0xff] (!%p265_p2) }
   0xd   : > { %927 = vperm.xlu0 (!%p265_p2), %1454, %v917_v45   ;;  %v922_v48 = vld [vmem:[%s1910_s2 + $0x28] sm:$0xff] (!%p265_p2)  ;;  %v1504_v50 = vld [vmem:[%s1909_s1 + $0x40] ss:$16 sps:$4 sm:$0xff] (!%p265_p2)   ;;  %v1506_v53 = vld [vmem:[%s1909_s1 + $0x64] ss:$16 sps:$4 sm:$0xff] (!%p265_p2)  }
   0xe   : > { %v978_v51 = vld [vmem:[%s1911_s3 + $0x28] sm:$0xff] (!%p265_p2)  ;;  %v924_v56 = vld [vmem:[%s1910_s2 + $0x38] sm:$0xff] (!%p265_p2)  ;;  %v975_v57 = vld [vmem:[%s1911_s3 + $0x10] sm:$0xff] (!%p265_p2) }
   0xf   : > { %s1918_s30 = smov (!%p296_p3, %s1270_s30), 1  ;;  %983 = vperm.xlu1 %1455, %v973_v41   ;;  %v1505_v52 = vld [vmem:[%s1909_s1 + $0x48] ss:$16 sps:$4 sm:$0xff]   ;;  %v1508_v54 = vld [vmem:[%s1909_s1 + $0x6c] ss:$16 sps:$4 sm:$0xff]   ;;  %v921_v61 = vld [vmem:[%s1910_s2 + $0x20] sm:$0xff] }
  0x10   : > { %s1333_s12 = sshll.u32 %s1918_s30, 8  ;;  %v1510_v58 = vld [vmem:[%s1909_s1 + $0x60] ss:$16 sps:$4 sm:$0xff]   ;;  %v1511_v59 = vld [vmem:[%s1909_s1 + $0x68] ss:$16 sps:$4 sm:$0xff]   ;;  %s303_s9 = scalar_lea.vmem %s1916_s8, %s1918_s30 }
  0x11   : > { %s1613_s15 = scalar_lea.vmem %s1908_s0, %s1333_s12  ;;  %952 = vperm.xlu0 %1454, %v922_v48   ;;  %v976_v60 = vld [vmem:[%s1911_s3 + $0x18] sm:$0xff]  ;;  %v977_v62 = vld [vmem:[%s1911_s3 + $0x20] sm:$0xff]  ;;  %v923_v63 = vld [vmem:[%s1910_s2 + $0x30] sm:$0xff] }
  0x12   : > { %v1456_v4 = vld [vmem:[%s1613_s15 + $0x40] sm:$0xff]   ;;  %v1460_v8 = vld [vmem:[%s1613_s15 + $0x48] sm:$0xff]   ;;  %v1464_v12 = vld [vmem:[%s1613_s15 + $0x50] sm:$0xff]  }
  0x13   : > { %v1457_v5 = vld [vmem:[%s1613_s15 + $0xc0] sm:$0xff]   ;;  %1334 = vmatprep.subr.bf16.mxu0 %v1456_v4  ;;  %v1461_v9 = vld [vmem:[%s1613_s15 + $0xc8] sm:$0xff]   ;;  %v1465_v13 = vld [vmem:[%s1613_s15 + $0xd0] sm:$0xff]   ;;  %988 = vperm.xlu1 %1455, %v974_v47  }
  0x14   : > { %v1458_v6 = vld [vmem:[%s1613_s15] sm:$0xff]   ;;  %1374 = vmatprep.subr.bf16.mxu1 %v1457_v5  ;;  %v1462_v10 = vld [vmem:[%s1613_s15 + $0x8] sm:$0xff]   ;;  %v1466_v14 = vld [vmem:[%s1613_s15 + $0x10] sm:$0xff]  }
  0x15   : > { %v1459_v7 = vld [vmem:[%s1613_s15 + $0x80] sm:$0xff]   ;;  %1335 = vmatpush3.bf16.msra.mxu0 %v1458_v6  ;;  %v1463_v11 = vld [vmem:[%s1613_s15 + $0x88] sm:$0xff]   ;;  %v1467_v15 = vld [vmem:[%s1613_s15 + $0x90] sm:$0xff]   ;;  %1008 = vperm.xlu0 %1454, %v978_v51  }
  0x16   : > { %1375 = vmatpush3.bf16.msra.mxu1 %v1459_v7  ;;  %1336 = vmatprep.subr.bf16.mxu0 %v1460_v8  ;;  %v1468_v16 = vld [vmem:[%s1613_s15 + $0x58] sm:$0xff]   ;;  %v1472_v20 = vld [vmem:[%s1613_s15 + $0x60] sm:$0xff]   ;;  %v1476_v24 = vld [vmem:[%s1613_s15 + $0x68] sm:$0xff]  }
  0x17   : > { %1376 = vmatprep.subr.bf16.mxu1 %v1461_v9  ;;  %v1469_v17 = vld [vmem:[%s1613_s15 + $0xd8] sm:$0xff]   ;;  %v1473_v21 = vld [vmem:[%s1613_s15 + $0xe0] sm:$0xff]   ;;  %v1477_v25 = vld [vmem:[%s1613_s15 + $0xe8] sm:$0xff]   ;;  %937 = vperm.xlu1 %1455, %v919_v49  }
  0x18   : > { %v1470_v18 = vld [vmem:[%s1613_s15 + $0x18] sm:$0xff]   ;;  %v1474_v22 = vld [vmem:[%s1613_s15 + $0x20] sm:$0xff]   ;;  %v1478_v26 = vld [vmem:[%s1613_s15 + $0x28] sm:$0xff]  }
  0x19   : > { %1337 = vmatpush3.bf16.msra.mxu0 %v1462_v10  ;;  %v1471_v19 = vld [vmem:[%s1613_s15 + $0x98] sm:$0xff]   ;;  %v1475_v23 = vld [vmem:[%s1613_s15 + $0xa0] sm:$0xff]   ;;  %v1479_v27 = vld [vmem:[%s1613_s15 + $0xa8] sm:$0xff]   ;;  %962 = vperm.xlu0 %1454, %v924_v56  }
  0x1a   : > { %1377 = vmatpush3.bf16.msra.mxu1 %v1463_v11  ;;  %1338 = vmatprep.subr.bf16.mxu0 %v1464_v12  ;;  %v1480_v28 = vld [vmem:[%s1613_s15 + $0x70] sm:$0xff]   ;;  %v1484_v32 = vld [vmem:[%s1613_s15 + $0x78] sm:$0xff]  }
  0x1b   : > { %1378 = vmatprep.subr.bf16.mxu1 %v1465_v13  ;;  %v1481_v29 = vld [vmem:[%s1613_s15 + $0xf0] sm:$0xff]   ;;  %v1485_v33 = vld [vmem:[%s1613_s15 + $0xf8] sm:$0xff]   ;;  %942 = vperm.xlu1 %1455, %v920_v55  }
  0x1c   : > { %v1482_v30 = vld [vmem:[%s1613_s15 + $0x30] sm:$0xff]   ;;  %v1486_v35 = vld [vmem:[%s1613_s15 + $0x38] sm:$0xff]  }
  0x1d   : > { %1339 = vmatpush3.bf16.msra.mxu0 %v1466_v14  ;;  %v1483_v31 = vld [vmem:[%s1613_s15 + $0xb0] sm:$0xff]   ;;  %v1487_v37 = vld [vmem:[%s1613_s15 + $0xb8] sm:$0xff]  }
  0x1e   : > { %1379 = vmatpush3.bf16.msra.mxu1 %v1467_v15  ;;  %1340 = vmatprep.subr.bf16.mxu0 %v1468_v16 }
  0x1f   : > { %1380 = vmatprep.subr.bf16.mxu1 %v1469_v17  ;;  %993 = vperm.xlu1 %1455, %v975_v57  }
  0x21   : > { %1341 = vmatpush3.bf16.msra.mxu0 %v1470_v18 }
  0x22   : > { %1381 = vmatpush3.bf16.msra.mxu1 %v1471_v19  ;;  %1342 = vmatprep.subr.bf16.mxu0 %v1472_v20 }
  0x23   : > { %1382 = vmatprep.subr.bf16.mxu1 %v1473_v21  ;;  %998 = vperm.xlu1 %1455, %v976_v60  }
  0x25   : > { %1343 = vmatpush3.bf16.msra.mxu0 %v1474_v22 }
  0x26   : > { %1383 = vmatpush3.bf16.msra.mxu1 %v1475_v23  ;;  %1344 = vmatprep.subr.bf16.mxu0 %v1476_v24 }
  0x27   : > { %1384 = vmatprep.subr.bf16.mxu1 %v1477_v25  ;;  %947 = vperm.xlu1 %1455, %v921_v61  }
  0x29   : > { %1345 = vmatpush3.bf16.msra.mxu0 %v1478_v26 }
  0x2a   : > { %1385 = vmatpush3.bf16.msra.mxu1 %v1479_v27  ;;  %1346 = vmatprep.subr.bf16.mxu0 %v1480_v28 }
  0x2b   : > { %1386 = vmatprep.subr.bf16.mxu1 %v1481_v29  ;;  %1003 = vperm.xlu1 %1455, %v977_v62  }
  0x2d   : > { %1347 = vmatpush3.bf16.msra.mxu0 %v1482_v30 }
  0x2e   : > { %1387 = vmatpush3.bf16.msra.mxu1 %v1483_v31  ;;  %1348 = vmatprep.subr.bf16.mxu0 %v1484_v32 }
  0x2f   : > { %1388 = vmatprep.subr.bf16.mxu1 %v1485_v33  ;;  %957 = vperm.xlu1 %1455, %v923_v63  }
  0x31   : > { %1349 = vmatpush3.bf16.msra.mxu0 %v1486_v35 }
  0x32   : > { %1389 = vmatpush3.bf16.msra.mxu1 %v1487_v37 }
  0x34   : > { %690 = vmatmul.mubr.bf16.vlgmr.msra.gmra.mrb[0].mxu0 %v1488_v34 }
  0x35   : > { %755 = vmatmul.mubr.bf16.vlgmr.msra.gmra.mrb[0].mxu1 %v1491_v36  ;;  %697 = vmatprep.mubr.bf16.mxu0 %v1494_v38 }
  0x36   : > { %762 = vmatprep.mubr.bf16.mxu1 %v1496_v39 }
  0x3c   : > { %698 = vmatmul.mubr.bf16.gmra.mrb[4].mxu0 %v1498_v42 }
  0x3d   : > { %763 = vmatmul.mubr.bf16.gmra.mrb[4].mxu1 %v1499_v43  ;;  %705 = vmatprep.mubr.bf16.mxu0 %v1500_v44 }
  0x3e   : > { %770 = vmatprep.mubr.bf16.mxu1 %v1502_v46 }
  0x44   : > { %706 = vmatmul.mubr.bf16.gmra.mrb[8].mxu0 %v1504_v50 }
  0x45   : > { %771 = vmatmul.mubr.bf16.gmra.mrb[8].mxu1 %v1505_v52  ;;  %713 = vmatprep.mubr.bf16.mxu0 %v1506_v53 }
  0x46   : > { %778 = vmatprep.mubr.bf16.mxu1 %v1508_v54 }
  0x4c   : > { %714 = vmatmul.mubr.bf16.gmra.mrb[12].mxu0 %v1510_v58 }
  0x4d   : > { %779 = vmatmul.mubr.bf16.gmra.mrb[12].mxu1 %v1511_v59 }
 0x107   : > { %v1350_v0 = vpop.f32.mrb[0].mxu0 }
 0x108   : > { %v1390_v1 = vpop.f32.mrb[0].mxu1  ;;  %v1351_v2 = vpop.f32.mrb[1].mxu0 }
 0x109   : > { %v1352_v3 = vadd.f32 %v1351_v2, %v1350_v0  ;;  %v1391_v4 = vpop.f32.mrb[1].mxu1  ;;  %v1353_v5 = vpop.f32.mrb[2].mxu0 }
 0x10a   : > { %v1392_v6 = vadd.f32 %v1391_v4, %v1390_v1  ;;  %v1393_v7 = vpop.f32.mrb[2].mxu1  ;;  %v1354_v8 = vpop.f32.mrb[3].mxu0 }
 0x10b   : > { %v1355_v9 = vadd.f32 %v1354_v8, %v1353_v5  ;;  %v1394_v10 = vpop.f32.mrb[3].mxu1 }
 0x10c   : > { %v1731_v11 = vadd.f32 %v1392_v6, %v1352_v3  ;;  %v1395_v12 = vadd.f32 %v1394_v10, %v1393_v7 }
 0x10e   : > { %v1733_v13 = vadd.f32 %v1395_v12, %v1355_v9  ;;  %v788_v14 = vsel %vm787_vm0, %v1731_v11, 0.0  ;;  %v821_v15 = vmul.f32 %v1731_v11, %v1731_v11 }
 0x10f   : > { %789 = vadd.xlane.f32.xlu0 %v788_v14  ;;  %v1356_v16 = vpop.f32.mrb[4].mxu0 }
 0x110   : > { %v1396_v17 = vpop.f32.mrb[4].mxu1  ;;  %v1357_v18 = vpop.f32.mrb[5].mxu0  ;;  %v829_v19 = vsel %vm787_vm0, %v821_v15, 0.0  ;;  %v822_v20 = vmul.f32 %v1733_v13, %v1733_v13  ;;  %v791_v27 = vsel %vm787_vm0, %v1733_v13, 0.0 }
 0x111   : > { %v1358_v21 = vadd.f32 %v1357_v18, %v1356_v16  ;;  %v1397_v22 = vpop.f32.mrb[5].mxu1  ;;  %830 = vadd.xlane.f32.xlu1 %v829_v19  ;;  %v1359_v23 = vpop.f32.mrb[6].mxu0  ;;  %v979_v18 = vld [vmem:[%s1911_s3 + $0x30] sm:$0xff]  ;;  %v980_v19 = vld [vmem:[%s1911_s3 + $0x38] sm:$0xff] }
 0x112   : > { %v1398_v24 = vadd.f32 %v1397_v22, %v1396_v17  ;;  %v1399_v25 = vpop.f32.mrb[6].mxu1  ;;  %v1360_v26 = vpop.f32.mrb[7].mxu0  ;;  %v832_v32 = vsel %vm787_vm0, %v822_v20, 0.0 }
 0x113   : > { %v1361_v28 = vadd.f32 %v1360_v26, %v1359_v23  ;;  %v1400_v29 = vpop.f32.mrb[7].mxu1  ;;  %792 = vadd.xlane.f32.xlu0 %v791_v27  ;;  %v1793_v20 = vpop.permute.xlu1 %932 }
 0x114   : > { %v1744_v30 = vadd.f32 %v1398_v24, %v1358_v21  ;;  %v1401_v31 = vadd.f32 %v1400_v29, %v1399_v25  ;;  %v928_v26 = vpop.permute.xlu0 %927 }
 0x115   : > { %833 = vadd.xlane.f32.xlu1 %v832_v32 }
 0x116   : > { %v1747_v33 = vadd.f32 %v1401_v31, %v1361_v28  ;;  %v794_v34 = vsel %vm787_vm0, %v1744_v30, 0.0  ;;  %v823_v35 = vmul.f32 %v1744_v30, %v1744_v30 }
 0x117   : > { %795 = vadd.xlane.f32.xlu0 %v794_v34  ;;  %v1362_v36 = vpop.f32.mrb[8].mxu0  ;;  %v1795_v21 = vpop.permute.xlu1 %983 }
 0x118   : > { %v1402_v37 = vpop.f32.mrb[8].mxu1  ;;  %v1363_v38 = vpop.f32.mrb[9].mxu0  ;;  %v797_v39 = vsel %vm787_vm0, %v1747_v33, 0.0  ;;  %v824_v40 = vmul.f32 %v1747_v33, %v1747_v33  ;;  %v835_v47 = vsel %vm787_vm0, %v823_v35, 0.0 }
 0x119   : > { %v1364_v41 = vadd.f32 %v1363_v38, %v1362_v36  ;;  %v1403_v42 = vpop.f32.mrb[9].mxu1  ;;  %798 = vadd.xlane.f32.xlu1 %v797_v39  ;;  %v1365_v43 = vpop.f32.mrb[10].mxu0 }
 0x11a   : > { %v1404_v44 = vadd.f32 %v1403_v42, %v1402_v37  ;;  %v1405_v45 = vpop.f32.mrb[10].mxu1  ;;  %v1366_v46 = vpop.f32.mrb[11].mxu0  ;;  %v838_v52 = vsel %vm787_vm0, %v824_v40, 0.0 }
 0x11b   : > { %v1367_v48 = vadd.f32 %v1366_v46, %v1365_v43  ;;  %v1406_v49 = vpop.f32.mrb[11].mxu1  ;;  %836 = vadd.xlane.f32.xlu0 %v835_v47  ;;  %v1797_v22 = vpop.permute.xlu1 %988 }
 0x11c   : > { %v1758_v50 = vadd.f32 %v1404_v44, %v1364_v41  ;;  %v1407_v51 = vadd.f32 %v1406_v49, %v1405_v45  ;;  %v1807_v28 = vpop.permute.xlu0 %952 }
 0x11d   : > { %839 = vadd.xlane.f32.xlu1 %v838_v52 }
 0x11e   : > { %v1761_v53 = vadd.f32 %v1407_v51, %v1367_v48  ;;  %v800_v54 = vsel %vm787_vm0, %v1758_v50, 0.0  ;;  %v825_v55 = vmul.f32 %v1758_v50, %v1758_v50 }
 0x11f   : > { %801 = vadd.xlane.f32.xlu0 %v800_v54  ;;  %v1368_v56 = vpop.f32.mrb[12].mxu0  ;;  %v1799_v23 = vpop.permute.xlu1 %937 }
 0x120   : > { %v1408_v57 = vpop.f32.mrb[12].mxu1  ;;  %v1369_v58 = vpop.f32.mrb[13].mxu0  ;;  %v803_v59 = vsel %vm787_vm0, %v1761_v53, 0.0  ;;  %v826_v60 = vmul.f32 %v1761_v53, %v1761_v53  ;;  %v841_v3 = vsel %vm787_vm0, %v825_v55, 0.0 }
 0x121   : > { %v1370_v61 = vadd.f32 %v1369_v58, %v1368_v56  ;;  %v1409_v62 = vpop.f32.mrb[13].mxu1  ;;  %804 = vadd.xlane.f32.xlu1 %v803_v59  ;;  %v1371_v63 = vpop.f32.mrb[14].mxu0 }
 0x122   : > { %v1410_v0 = vadd.f32 %v1409_v62, %v1408_v57  ;;  %v1411_v1 = vpop.f32.mrb[14].mxu1  ;;  %v1372_v2 = vpop.f32.mrb[15].mxu0  ;;  %v844_v8 = vsel %vm787_vm0, %v826_v60, 0.0 }
 0x123   : > { %v1373_v4 = vadd.f32 %v1372_v2, %v1371_v63  ;;  %v1412_v5 = vpop.f32.mrb[15].mxu1  ;;  %842 = vadd.xlane.f32.xlu0 %v841_v3  ;;  %v1801_v24 = vpop.permute.xlu1 %942 }
 0x124   : > { %v1772_v6 = vadd.f32 %v1410_v0, %v1370_v61  ;;  %v1413_v7 = vadd.f32 %v1412_v5, %v1411_v1  ;;  %v1811_v31 = vpop.permute.xlu0 %1008 }
 0x125   : > { %845 = vadd.xlane.f32.xlu1 %v844_v8 }
 0x126   : > { %v1775_v9 = vadd.f32 %v1413_v7, %v1373_v4  ;;  %v806_v10 = vsel %vm787_vm0, %v1772_v6, 0.0  ;;  %v827_v12 = vmul.f32 %v1772_v6, %v1772_v6 }
 0x127   : > { %807 = vadd.xlane.f32.xlu0 %v806_v10  ;;  %v1803_v25 = vpop.permute.xlu1 %993 }
 0x128   : > { %v809_v14 = vsel %vm787_vm0, %v1775_v9, 0.0  ;;  %v828_v15 = vmul.f32 %v1775_v9, %v1775_v9  ;;  %v847_v16 = vsel %vm787_vm0, %v827_v12, 0.0  ;;  %v1815_v34 = vpop.permute.xlu0 %962 }
 0x129   : > { %810 = vadd.xlane.f32.xlu1 %v809_v14 }
 0x12a   : > { %v850_v17 = vsel %vm787_vm0, %v828_v15, 0.0 }
 0x12b   : > { %848 = vadd.xlane.f32.xlu0 %v847_v16  ;;  %v1805_v27 = vpop.permute.xlu1 %998 }
 0x12d   : > { %851 = vadd.xlane.f32.xlu1 %v850_v17 }
 0x12f   : > { %v1809_v29 = vpop.permute.xlu1 %947 }
 0x133   : > { %v1813_v32 = vpop.permute.xlu1 %1003 }
 0x137   : > { %v1817_v35 = vpop.permute.xlu1 %957 }
 0x13e   : > { %1013 = vperm.xlu1 %1455, %v979_v18  }
 0x141   : > { %1018 = vperm.xlu0 %1454, %v980_v19  }
 0x19c   : > { %v790_v36 = vpop.xlane.xlu0 %789 }
 0x19d   : > { %v813_v37 = vmul.f32 0.25, %v790_v36 }
 0x19e   : > { %v831_v38 = vpop.xlane.xlu1 %830 }
 0x19f   : > { %v861_v39 = vmul.f32 %v813_v37, %v813_v37  ;;  %v853_v40 = vmul.f32 0.25, %v831_v38  ;;  %v885_v10 = vsub.f32 %v1731_v11, %v813_v37 }
 0x1a0   : > { %v793_v41 = vpop.xlane.xlu0 %792 }
 0x1a1   : > { %v869_v42 = vsub.f32 %v853_v40, %v861_v39  ;;  %v814_v43 = vmul.f32 0.25, %v793_v41 }
 0x1a2   : > { %v834_v44 = vpop.xlane.xlu1 %833 }
 0x1a3   : > { %v877_v45 = vmax.f32 %v869_v42, 0.0  ;;  %v862_v46 = vmul.f32 %v814_v43, %v814_v43  ;;  %v854_v47 = vmul.f32 0.25, %v834_v44  ;;  %v886_v11 = vsub.f32 %v1733_v13, %v814_v43 }
 0x1a4   : > { %v796_v48 = vpop.xlane.xlu0 %795 }
 0x1a5   : > { %v893_v49 = vadd.f32 1e-05, %v877_v45  ;;  %v870_v51 = vsub.f32 %v854_v47, %v862_v46  ;;  %v1819_v52 = vmul.f32 0.25, %v796_v48 }
 0x1a6   : > { %v799_v54 = vpop.xlane.xlu1 %798 }
 0x1a7   : > { %1514 = vrsqrt.f32 %v893_v49  ;;  %v878_v55 = vmax.f32 %v870_v51, 0.0  ;;  %v1821_v56 = vmul.f32 0.25, %v799_v54  ;;  %v863_v59 = vmul.f32 %v1819_v52, %v1819_v52 }
 0x1a8   : > { %v837_v57 = vpop.xlane.xlu0 %836 }
 0x1a9   : > { %v894_v58 = vadd.f32 1e-05, %v878_v55  ;;  %v855_v60 = vmul.f32 0.25, %v837_v57  ;;  %v864_v62 = vmul.f32 %v1821_v56, %v1821_v56 }
 0x1aa   : > { %v840_v61 = vpop.xlane.xlu1 %839 }
 0x1ab   : > { %1516 = vrsqrt.f32 %v894_v58  ;;  %v871_v63 = vsub.f32 %v855_v60, %v863_v59  ;;  %v856_v0 = vmul.f32 0.25, %v840_v61  ;;  %v887_v60 = vsub.f32 %v1744_v30, %v1819_v52 }
 0x1ac   : > { %v802_v1 = vpop.xlane.xlu0 %801 }
 0x1ad   : > { %v879_v2 = vmax.f32 %v871_v63, 0.0  ;;  %v872_v3 = vsub.f32 %v856_v0, %v864_v62  ;;  %v1827_v4 = vmul.f32 0.25, %v802_v1 }
 0x1ae   : > { %v805_v5 = vpop.xlane.xlu1 %804 }
 0x1af   : > { %v895_v7 = vadd.f32 1e-05, %v879_v2  ;;  %v880_v8 = vmax.f32 %v872_v3, 0.0  ;;  %v1830_v12 = vmul.f32 0.25, %v805_v5  ;;  %v865_v17 = vmul.f32 %v1827_v4, %v1827_v4 }
 0x1b0   : > { %v843_v14 = vpop.xlane.xlu0 %842  ;;  %v888_v3 = vsub.f32 %v1747_v33, %v1821_v56 }
 0x1b1   : > { %v1515_v15 = vpop.eup %1514  ;;  %1518 = vrsqrt.f32 %v895_v7  ;;  %v896_v16 = vadd.f32 1e-05, %v880_v8  ;;  %v857_v18 = vmul.f32 0.25, %v843_v14  ;;  %v866_v38 = vmul.f32 %v1830_v12, %v1830_v12 }
 0x1b2   : > { %v846_v19 = vpop.xlane.xlu1 %845  ;;  %v909_v36 = vmul.f32 %v1515_v15, %v885_v10 }
 0x1b3   : > { %1520 = vrsqrt.f32 %v896_v16  ;;  %v873_v39 = vsub.f32 %v857_v18, %v865_v17  ;;  %v858_v40 = vmul.f32 0.25, %v846_v19  ;;  %v889_v19 = vsub.f32 %v1758_v50, %v1827_v4 }
 0x1b4   : > { %v808_v37 = vpop.xlane.xlu0 %807  ;;  %v965_v41 = vmul.f32 %v928_v26, %v909_v36 }
 0x1b5   : > { %v1517_v42 = vpop.eup %1516  ;;  %v881_v44 = vmax.f32 %v873_v39, 0.0  ;;  %v874_v45 = vsub.f32 %v858_v40, %v866_v38  ;;  %v1837_v46 = vmul.f32 0.25, %v808_v37  ;;  %v890_v39 = vsub.f32 %v1761_v53, %v1830_v12 }
 0x1b6   : > { %v811_v47 = vpop.xlane.xlu1 %810  ;;  %v1021_v48 = vadd.f32 %v1795_v21, %v965_v41  ;;  %v910_v49 = vmul.f32 %v1517_v42, %v886_v11 }
 0x1b7   : > { %v897_v51 = vadd.f32 1e-05, %v881_v44  ;;  %v882_v54 = vmax.f32 %v874_v45, 0.0  ;;  %v1840_v55 = vmul.f32 0.25, %v811_v47  ;;  %v867_v43 = vmul.f32 %v1837_v46, %v1837_v46 }
 0x1b8   : > { %v849_v57 = vpop.xlane.xlu0 %848  ;;  %vm1029_vm1 = vcmp.gt.f32.partialorder %v1021_v48, 0.0  ;;  %v1037_v58 = vmul.f32 0.2, %v1021_v48  ;;  %v966_v13 = vmul.f32 %v1793_v20, %v910_v49  ;;  %v891_v12 = vsub.f32 %v1772_v6, %v1837_v46 }
 0x1b9   : > { %1522 = vrsqrt.f32 %v897_v51  ;;  %v898_v26 = vadd.f32 1e-05, %v882_v54  ;;  %v859_v59 = vmul.f32 0.25, %v849_v57  ;;  %v868_v21 = vmul.f32 %v1840_v55, %v1840_v55 }
 0x1ba   : > { %v852_v61 = vpop.xlane.xlu1 %851  ;;  %v1045_v62 = vsel %vm1029_vm1, %v1021_v48, %v1037_v58  ;;  %v1022_v63 = vadd.f32 %v1797_v22, %v966_v13  ;;  %v892_v48 = vsub.f32 %v1775_v9, %v1840_v55 }
 0x1bb   : > { %v1519_v0 = vpop.eup %1518  ;;  %1524 = vrsqrt.f32 %v898_v26  ;;  %v875_v1 = vsub.f32 %v859_v59, %v867_v43  ;;  %v860_v20 = vmul.f32 0.25, %v852_v61  ;;  %v1053_v2 = vsel %vm787_vm0, %v1045_v62, -inf  ;;  %v1512_v61 = vld [vmem:[%s1912_s4] sm:$0xff]  }
 0x1bc   : > { %1054 = vmax.xlane.f32.xlu1 %v1053_v2  ;;  %vm1030_vm2 = vcmp.gt.f32.partialorder %v1022_v63, 0.0  ;;  %v1038_v5 = vmul.f32 0.2, %v1022_v63  ;;  %v911_v30 = vmul.f32 %v1519_v0, %v887_v60  ;;  %1431 = vmatprep.mubr.msk.bf16.mxu0 %vm1099_vm9, %v1512_v61 }
 0x1bd   : > { %v1521_v52 = vpop.eup %1520  ;;  %v883_v7 = vmax.f32 %v875_v1, 0.0  ;;  %v876_v8 = vsub.f32 %v860_v20, %v868_v21 }
 0x1be   : > { %v1046_v10 = vsel %vm1030_vm2, %v1022_v63, %v1038_v5  ;;  %v967_v14 = vmul.f32 %v1799_v23, %v911_v30  ;;  %v912_v22 = vmul.f32 %v1521_v52, %v888_v3  ;;  %v1014_v46 = vpop.permute.xlu1 %1013 }
 0x1bf   : > { %v899_v15 = vadd.f32 1e-05, %v883_v7  ;;  %v884_v16 = vmax.f32 %v876_v8, 0.0  ;;  %v1056_v17 = vsel %vm787_vm0, %v1046_v10, -inf  ;;  %v1513_v8 = vld [vmem:[%s1912_s4 + $0x8] sm:$0xff]   ;;  %v1543_v10 = vmov 0.0  }
 0x1c0   : > { %1057 = vmax.xlane.f32.xlu0 %v1056_v17  ;;  %v1023_v18 = vadd.f32 %v1803_v25, %v967_v14  ;;  %v968_v33 = vmul.f32 %v1801_v24, %v912_v22  ;;  %v1019_v9 = vpop.permute.xlu0 %1018  ;;  %1435 = vmatprep.subr.bf16.mxu1 %v1543_v10  ;;  %v1087_v14 = vld [vmem:[%s1913_s5 + $0x10] sm:$0xff]  ;;  %v1085_v22 = vld [vmem:[%s1913_s5] sm:$0xff] }
 0x1c1   : > { %1526 = vrsqrt.f32 %v899_v15  ;;  %v900_v56 = vadd.f32 1e-05, %v884_v16  ;;  %1439 = vmatprep.mubr.msk.bf16.mxu1 %vm1544_vm10, %v1543_v10  ;;  %v1088_v16 = vld [vmem:[%s1913_s5 + $0x18] sm:$0xff] }
 0x1c2   : > { %vm1031_vm3 = vcmp.gt.f32.partialorder %v1023_v18, 0.0  ;;  %v1039_v36 = vmul.f32 0.2, %v1023_v18  ;;  %v1024_v38 = vadd.f32 %v1805_v27, %v968_v33  ;;  %v1086_v33 = vld [vmem:[%s1913_s5 + $0x8] sm:$0xff] }
 0x1c3   : > { %v1523_v23 = vpop.eup %1522  ;;  %1528 = vrsqrt.f32 %v900_v56 }
 0x1c4   : > { %v1047_v40 = vsel %vm1031_vm3, %v1023_v18, %v1039_v36  ;;  %vm1032_vm4 = vcmp.gt.f32.partialorder %v1024_v38, 0.0  ;;  %v1040_v11 = vmul.f32 0.2, %v1024_v38  ;;  %v913_v25 = vmul.f32 %v1523_v23, %v889_v19 }
 0x1c5   : > { %v1525_v37 = vpop.eup %1524  ;;  %v1059_v24 = vsel %vm787_vm0, %v1047_v40, -inf }
 0x1c6   : > { %1060 = vmax.xlane.f32.xlu0 %v1059_v24  ;;  %v1048_v41 = vsel %vm1032_vm4, %v1024_v38, %v1040_v11  ;;  %v969_v50 = vmul.f32 %v1809_v29, %v913_v25  ;;  %v914_v4 = vmul.f32 %v1525_v37, %v890_v39 }
 0x1c7   : > { %v1062_v42 = vsel %vm787_vm0, %v1048_v41, -inf }
 0x1c8   : > { %1063 = vmax.xlane.f32.xlu1 %v1062_v42  ;;  %v1025_v27 = vadd.f32 %v1813_v32, %v969_v50  ;;  %v970_v53 = vmul.f32 %v1807_v28, %v914_v4 }
 0x1ca   : > { %vm1033_vm5 = vcmp.gt.f32.partialorder %v1025_v27, 0.0  ;;  %v1041_v44 = vmul.f32 0.2, %v1025_v27  ;;  %v1026_v45 = vadd.f32 %v1811_v31, %v970_v53  ;;  %v1170_v53 = vld [vmem:[#allocation2] sm:$0x1] }
 0x1cb   : > { %v1527_v47 = vpop.eup %1526 }
 0x1cc   : > { %v915_v29 = vmul.f32 %v1527_v47, %v891_v12  ;;  %v1049_v49 = vsel %vm1033_vm5, %v1025_v27, %v1041_v44  ;;  %vm1034_vm6 = vcmp.gt.f32.partialorder %v1026_v45, 0.0  ;;  %v1042_v51 = vmul.f32 0.2, %v1026_v45  ;;  %v1167_v27 = vld [vmem:[%s1914_s6] sm:$0x1] }
 0x1cd   : > { %v1529_v54 = vpop.eup %1528  ;;  %v1065_v32 = vsel %vm787_vm0, %v1049_v49, -inf }
 0x1ce   : > { %v971_v28 = vmul.f32 %v1817_v35, %v915_v29  ;;  %v916_v57 = vmul.f32 %v1529_v54, %v892_v48  ;;  %1066 = vmax.xlane.f32.xlu0 %v1065_v32  ;;  %v1050_v6 = vsel %vm1034_vm6, %v1026_v45, %v1042_v51 }
 0x1cf   : > { %v1068_v58 = vsel %vm787_vm0, %v1050_v6, -inf }
 0x1d0   : > { %v1027_v31 = vadd.f32 %v1014_v46, %v971_v28  ;;  %v972_v13 = vmul.f32 %v1815_v34, %v916_v57  ;;  %1069 = vmax.xlane.f32.xlu1 %v1068_v58 }
 0x1d2   : > { %v1043_v55 = vmul.f32 0.2, %v1027_v31  ;;  %v1028_v26 = vadd.f32 %v1019_v9, %v972_v13  ;;  %vm1035_vm7 = vcmp.gt.f32.partialorder %v1027_v31, 0.0 }
 0x1d4   : > { %v1044_v43 = vmul.f32 0.2, %v1028_v26  ;;  %v1051_v59 = vsel %vm1035_vm7, %v1027_v31, %v1043_v55  ;;  %vm1036_vm8 = vcmp.gt.f32.partialorder %v1028_v26, 0.0 }
 0x1d5   : > { %v1071_v60 = vsel %vm787_vm0, %v1051_v59, -inf }
 0x1d6   : > { %1072 = vmax.xlane.f32.xlu0 %v1071_v60  ;;  %v1052_v35 = vsel %vm1036_vm8, %v1028_v26, %v1044_v43 }
 0x1d7   : > { %v1074_v21 = vsel %vm787_vm0, %v1052_v35, -inf  ;;  %vm1221_vm0 = vcmask 0  }
 0x1d8   : > { %1075 = vmax.xlane.f32.xlu1 %v1074_v21 }
 0x249   : > { %v1055_v34 = vpop.xlane.xlu1 %1054 }
 0x24d   : > { %v1058_v62 = vpop.xlane.xlu0 %1057 }
 0x24e   : > { %v1081_v63 = vpack.c.bf16 %v1058_v62, %v1055_v34 }
 0x250   : > { %1423 = vmatprep.subr.bf16.mxu0 %v1081_v63 }
 0x251   : > { %1424 = vmatpush3.bf16.msra.mxu0 %v1081_v63 }
 0x253   : > { %v1061_v0 = vpop.xlane.xlu0 %1060 }
 0x255   : > { %v1064_v1 = vpop.xlane.xlu1 %1063 }
 0x256   : > { %v1082_v20 = vpack.c.bf16 %v1064_v1, %v1061_v0 }
 0x258   : > { %1425 = vmatprep.subr.bf16.mxu0 %v1082_v20 }
 0x259   : > { %1426 = vmatpush3.bf16.msra.mxu0 %v1082_v20 }
 0x25b   : > { %v1067_v2 = vpop.xlane.xlu0 %1066 }
 0x25d   : > { %v1070_v3 = vpop.xlane.xlu1 %1069 }
 0x25e   : > { %v1083_v5 = vpack.c.bf16 %v1070_v3, %v1067_v2 }
 0x260   : > { %1427 = vmatprep.subr.bf16.mxu0 %v1083_v5 }
 0x261   : > { %1428 = vmatpush3.bf16.msra.mxu0 %v1083_v5 }
 0x263   : > { %v1073_v30 = vpop.xlane.xlu0 %1072 }
 0x265   : > { %v1076_v52 = vpop.xlane.xlu1 %1075 }
 0x266   : > { %v1084_v7 = vpack.c.bf16 %v1076_v52, %v1073_v30 }
 0x268   : > { %1429 = vmatprep.subr.bf16.mxu0 %v1084_v7 }
 0x269   : > { %1430 = vmatpush3.bf16.msra.mxu0 %v1084_v7 }
 0x26c   : > { %1432 = vmatmul.mubr.msk.bf16.vlgmr.msra.gmra.mrb[16].mxu0 %vm1099_vm9, %v1513_v8 }
 0x33f   : > { %v1433_v15 = vpop.f32.mrb[16].mxu0 }
 0x340   : > { %v1149_v17 = vadd.f32 %v1433_v15, %v1087_v14  ;;  %v1140_v18 = vpop.f32.mrb[17].mxu0 }
 0x341   : > { %v1141_v56 = vadd.f32 %v1140_v18, %v1085_v22  ;;  %v1434_v19 = vpop.f32.mrb[18].mxu0 }
 0x342   : > { %v1161_v36 = vmul.f32 0.2, %v1149_v17  ;;  %v1152_v38 = vadd.f32 %v1434_v19, %v1088_v16  ;;  %v1143_v23 = vpop.f32.mrb[19].mxu0  ;;  %vm1157_vm11 = vcmp.gt.f32.partialorder %v1149_v17, 0.0 }
 0x343   : > { %v1159_v39 = vmul.f32 0.2, %v1141_v56  ;;  %v1144_v40 = vadd.f32 %v1143_v23, %v1086_v33  ;;  %vm1155_vm12 = vcmp.gt.f32.partialorder %v1141_v56, 0.0 }
 0x344   : > { %vm1158_vm13 = vcmp.gt.f32.partialorder %v1152_v38, 0.0  ;;  %v1162_v11 = vmul.f32 0.2, %v1152_v38  ;;  %v1165_v37 = vsel %vm1157_vm11, %v1149_v17, %v1161_v36 }
 0x345   : > { %vm1156_vm14 = vcmp.gt.f32.partialorder %v1144_v40, 0.0  ;;  %v1160_v25 = vmul.f32 0.2, %v1144_v40  ;;  %v1163_v41 = vsel %vm1155_vm12, %v1141_v56, %v1159_v39 }
 0x346   : > { %v1166_v24 = vsel %vm1158_vm13, %v1152_v38, %v1162_v11 }
 0x347   : > { %v1169_v50 = vpack.c.bf16 %v1166_v24, %v1165_v37  ;;  %v1164_v4 = vsel %vm1156_vm14, %v1144_v40, %v1160_v25 }
 0x348   : > { %v1168_v42 = vpack.c.bf16 %v1164_v4, %v1163_v41 }
 0x34a   : > { %1436 = vmatpush3.bf16.msra.mxu1 %v1168_v42 }
 0x34b   : > { %1437 = vmatprep.subr.bf16.mxu1 %v1543_v10 }
 0x34e   : > { %1438 = vmatpush3.bf16.msra.mxu1 %v1169_v50 }
 0x351   : > { %1440 = vmatmul.mubr.msk.bf16.vlgmr.msra.gmra.mrb[16].mxu1 %vm1171_vm15, %v1167_v27 }
 0x424   : > { %v1209_v12 = vpop.f32.mrb[16].mxu1 }
 0x425   : > { %v1210_v44 = vadd.f32 %v1209_v12, %v1170_v53  ;;  %v1441_v45 = vpop.f32.mrb[17].mxu1 }
 0x426   : > { %v1212_v47 = vpop.f32.mrb[18].mxu1 }
 0x427   : > { %v1330_v48 = vmul.f32 -1.442695, %v1210_v44  ;;  %v1442_v29 = vpop.f32.mrb[19].mxu1 }
 0x429   : > { %1530 = vpow2.f32 %v1330_v48 }
 0x433   : > { %v1531_v49 = vpop.eup %1530 }
 0x434   : > { %v1218_v51 = vadd.f32 1.0, %v1531_v49 }
 0x436   : > { %1532 = vrcp.f32 %v1218_v51 }
 0x440   : > { %v1533_v54 = vpop.eup %1532 }
 0x441   : > { %1222 = vst.msk [vmem:[%s303_s9] sm:$0x1] %vm1221_vm0, %v1533_v54 }
 0x442 PF: > { %s20_s29 = sadd.s32 1, %s1540_s29  }
 0x443   : > { %p17_p4 = scmp.ge.s32.totalorder %s20_s29, 4  }
 0x445   :  { %19 = sbr.rel (!%p17_p4) target bundleno = 3 (0x3), region = 82 }

</bundles_post_ra>
